<compile_context>
chip_gen: v6e
topology: v6e:2x2x1
jax: 0.10.0
libtpu: 0.0.40
codegen_flags: <defaults>
</compile_context>

<pallas_src>
import functools

import jax
import jax.numpy as jnp
import numpy as np
from jax.experimental import pallas as pl
from jax.experimental.pallas import tpu as pltpu


_LANE = 128
_SUBLANE = 8
_NEG_INF = -1e30


def _round_up(x, m):
    return ((x + m - 1) // m) * m


def _pad2(a, rows, cols):
    out = jnp.zeros((rows, cols), a.dtype)
    return out.at[: a.shape[0], : a.shape[1]].set(a)


def _make_gru_kernel(T, Bp, Hp, unroll):
    """Fused-gate GRU recurrence + Linear + log_softmax, all resident in VMEM.

    Packed gate order along the 3*Hp axis is (r, n, z): the serial dependency
    chain each step is hh_r -> sigmoid(r) -> tanh(n), so n sits in the second
    128-lane tile (drains right after r), while z — independent until the
    final blend — drains last.
    """

    def kernel(x2_ref, h0_ref, wi_ref, wh_ref, bi_ref, bhn_ref,
               wout_ref, bout_ref, logp_ref, hN_ref, xproj_scr):
        mm_dtype = wi_ref.dtype  # bf16 (fast path) or f32 (checking path)

        # (1) Hoisted input projection for ALL timesteps: one big MXU matmul,
        #     entirely off the serial chain.  Folded biases (b_ir+b_hr, b_in,
        #     b_iz+b_hz) are added here once.  Stored per-timestep so the
        #     recurrence uses a cheap leading-axis index.
        proj = (jnp.dot(x2_ref[...], wi_ref[...],
                        preferred_element_type=jnp.float32)
                + bi_ref[...])                                    # (T*Bp, 3Hp) f32
        for t in range(T):  # static, prologue-only stores (sublane-aligned)
            xproj_scr[t] = proj[t * Bp:(t + 1) * Bp, :].astype(xproj_scr.dtype)

        # Loop-invariant values hoisted out of the serial loop.
        wh = wh_ref[...]                                          # (Hp, 3Hp)
        b_hn = jnp.broadcast_to(bhn_ref[...], (Bp, Hp))
        h0 = h0_ref[...].astype(jnp.float32)                      # (Bp, Hp)

        # (2) Serial recurrence: one fused (Bp,Hp)@(Hp,3Hp) matmul per step.
        # TODO(synk): stage `wh` in the MXU across the loop via
        # pltpu.matmul_push_rhs / matmul_acc_lhs / matmul_pop once that path
        # is validated on-target (biggest remaining per-step latency cut).
        def step(t, h_prev):
            gi = xproj_scr[t]                                     # (Bp, 3Hp)
            hh = jnp.dot(h_prev.astype(mm_dtype), wh,
                         preferred_element_type=jnp.float32)      # (Bp, 3Hp) f32
            r = jax.nn.sigmoid(gi[:, 0:Hp] + hh[:, 0:Hp])
            n = jnp.tanh(gi[:, Hp:2 * Hp] + r * (hh[:, Hp:2 * Hp] + b_hn))
            z = jax.nn.sigmoid(gi[:, 2 * Hp:3 * Hp] + hh[:, 2 * Hp:3 * Hp])
            return (1.0 - z) * n + z * h_prev

        h_T = jax.lax.fori_loop(0, T, step, h0, unroll=unroll)

        # (3) Output head: Linear + log_softmax.  Padded logit lanes carry a
        #     -1e30 bias (kept f32; never cast it down) so exp() underflows
        #     to 0 and they never win the max.
        hN_ref[...] = h_T.astype(hN_ref.dtype)
        logits = (jnp.dot(h_T.astype(mm_dtype), wout_ref[...],
                          preferred_element_type=jnp.float32)
                  + bout_ref[...])                                # (Bp, Op)
        m = jnp.max(logits, axis=-1, keepdims=True)
        s = logits - m
        lse = jnp.log(jnp.sum(jnp.exp(s), axis=-1, keepdims=True))
        logp_ref[...] = (s - lse).astype(logp_ref.dtype)

    return kernel


_WEIGHT_ORDER = ("wir", "wiz", "win", "whr", "whz", "whn",
                 "bir", "biz", "bin", "bhr", "bhz", "bhn",
                 "wout", "bout")


def rnn_forward(x, h0, params, *, matmul_dtype=jnp.bfloat16):
    """Equivalent of RNN.forward(input, hidden): returns (log_probs, hidden)."""
    T, B, I = x.shape
    H = h0.shape[-1]
    O = params["wout"].shape[-1]

    Hp = _round_up(H, _LANE)
    Op = _round_up(O, _LANE)
    Bp = _round_up(B, _SUBLANE)
    # NOTE: to fill more MXU rows (and both v7x TensorCores), pack additional
    # independent sequences into B rather than issuing separate calls; the
    # per-step latency barely grows with Bp.

    p = params
    # --- pack & pad weights; packed gate order is (r, n, z), each gate on its
    #     own 128-lane tile of the 3Hp axis.
    wi = jnp.concatenate([_pad2(p["wir"], I, Hp),
                          _pad2(p["win"], I, Hp),
                          _pad2(p["wiz"], I, Hp)], axis=1).astype(matmul_dtype)
    wh = jnp.concatenate([_pad2(p["whr"], Hp, Hp),
                          _pad2(p["whn"], Hp, Hp),
                          _pad2(p["whz"], Hp, Hp)], axis=1).astype(matmul_dtype)
    # Fold b_ir+b_hr and b_iz+b_hz; b_in rides with the x-projection.  b_hn
    # must stay separate (it sits inside the r*(...) term).
    bi = jnp.concatenate([_pad2(p["bir"] + p["bhr"], 1, Hp),
                          _pad2(p["bin"], 1, Hp),
                          _pad2(p["biz"] + p["bhz"], 1, Hp)], axis=1)      # f32
    bhn = _pad2(p["bhn"], 1, Hp)                                            # f32
    wout = _pad2(p["wout"], Hp, Op).astype(matmul_dtype)
    bout = jnp.full((1, Op), _NEG_INF, jnp.float32).at[:, :O].set(p["bout"])

    # --- pad activations; flatten time into rows for the one-shot projection.
    #     Padded batch rows (B..Bp) develop nonzero hidden state (gi == bi for
    #     zero inputs); they are sliced off below — never read them.
    x_p = jnp.zeros((T, Bp, I), jnp.float32).at[:, :B, :].set(
        x.astype(jnp.float32))
    x2 = x_p.reshape(T * Bp, I).astype(matmul_dtype)
    h0_p = jnp.zeros((Bp, Hp), jnp.float32).at[:B, :H].set(h0[0])

    inputs = (x2, h0_p, wi, wh, bi, bhn, wout, bout)

    # Cost / VMEM bookkeeping from the actual buffer sizes.
    itemsize = jnp.dtype(matmul_dtype).itemsize
    scratch_bytes = T * Bp * 3 * Hp * itemsize
    out_bytes = (Bp * Op + Bp * Hp) * 4
    in_bytes = int(sum(int(np.prod(a.shape)) * a.dtype.itemsize for a in inputs))
    vmem_limit = int(min(64 * 1024 * 1024,                   # fits v7x's 64 MiB
                         max(8 * 1024 * 1024,                # generous floor
                             4 * (in_bytes + out_bytes + scratch_bytes))))

    flops = (2 * T * Bp * I * 3 * Hp          # hoisted x-projection
             + 2 * T * Bp * Hp * 3 * Hp       # recurrent matmuls
             + 2 * Bp * Hp * Op)              # output head
    transcendentals = T * Bp * 3 * Hp + Bp * Op

    unroll = True if T <= 16 else 8           # cap unroll for long sequences

    vmem_spec = pl.BlockSpec(memory_space=pltpu.MemorySpace.VMEM)

    logp_p, hN_p = pl.pallas_call(
        _make_gru_kernel(T, Bp, Hp, unroll),
        out_shape=(
            jax.ShapeDtypeStruct((Bp, Op), jnp.float32),   # log-probs (lane-dense)
            jax.ShapeDtypeStruct((Bp, Hp), jnp.float32),   # final hidden
        ),
        in_specs=[vmem_spec] * len(inputs),
        out_specs=(vmem_spec, vmem_spec),
        scratch_shapes=[pltpu.VMEM((T, Bp, 3 * Hp), matmul_dtype)],
        compiler_params=pltpu.CompilerParams(vmem_limit_bytes=vmem_limit),
        cost_estimate=pl.CostEstimate(
            flops=flops, transcendentals=transcendentals,
            bytes_accessed=in_bytes + out_bytes),
    )(*inputs)

    # unpad back to the module's logical shapes
    log_probs = logp_p[:B, :O]
    hidden = hN_p[:B, :H][None]          # (1, B, H) like PyTorch nn.GRU
    return log_probs, hidden


def init_params(key, input_size, hidden_size, output_size):
    """Deterministic init mirroring PyTorch's U(-1/sqrt(H), 1/sqrt(H))."""
    bound = 1.0 / np.sqrt(hidden_size)
    keys = jax.random.split(key, len(_WEIGHT_ORDER))
    shapes = {
        "wir": (input_size, hidden_size), "wiz": (input_size, hidden_size),
        "win": (input_size, hidden_size),
        "whr": (hidden_size, hidden_size), "whz": (hidden_size, hidden_size),
        "whn": (hidden_size, hidden_size),
        "bir": (1, hidden_size), "biz": (1, hidden_size), "bin": (1, hidden_size),
        "bhr": (1, hidden_size), "bhz": (1, hidden_size), "bhn": (1, hidden_size),
        "wout": (hidden_size, output_size), "bout": (1, output_size),
    }
    return {
        name: jax.random.uniform(k, shapes[name], jnp.float32, -bound, bound)
        for name, k in zip(_WEIGHT_ORDER, keys)
    }


def ref_forward(x, h0, p):
    """Pure-JAX reference of the PyTorch module forward."""
    def step(h, x_t):
        r = jax.nn.sigmoid(x_t @ p["wir"] + p["bir"] + h @ p["whr"] + p["bhr"])
        z = jax.nn.sigmoid(x_t @ p["wiz"] + p["biz"] + h @ p["whz"] + p["bhz"])
        n = jnp.tanh(x_t @ p["win"] + p["bin"] + r * (h @ p["whn"] + p["bhn"]))
        h_new = (1.0 - z) * n + z * h
        return h_new, h_new
    hT, _ = jax.lax.scan(step, h0[0], x)
    logits = hT @ p["wout"] + p["bout"]
    return jax.nn.log_softmax(logits, axis=-1), hT[None]


if __name__ == "__main__":
    SEQ, BATCH, INPUT, HIDDEN, OUTPUT = 8, 2, 16, 32, 8

    key = jax.random.PRNGKey(0)
    k_x, k_p = jax.random.split(key)
    x = jax.random.normal(k_x, (SEQ, BATCH, INPUT), jnp.float32)
    h0 = jnp.zeros((1, BATCH, HIDDEN), jnp.float32)   # RNN.initHidden() (batched)
    params = init_params(k_p, INPUT, HIDDEN, OUTPUT)

    # f32 matmul path (tight correctness check vs. the pure-JAX reference).
    fwd_f32 = jax.jit(functools.partial(rnn_forward, matmul_dtype=jnp.float32))
    logp32, hid32 = fwd_f32(x, h0, params)
    jax.block_until_ready((logp32, hid32))

    # bf16 matmul-operand path (MXU-native; the performance-preferred config).
    # NOTE: bf16 operand casts of h_prev compound over the recurrence; at long
    # T re-validate or fall back to the f32 path.
    fwd_bf16 = jax.jit(functools.partial(rnn_forward, matmul_dtype=jnp.bfloat16))
    logp16, hid16 = fwd_bf16(x, h0, params)
    jax.block_until_ready((logp16, hid16))

    ref_lp, ref_h = ref_forward(x, h0, params)
    np.testing.assert_allclose(np.asarray(logp32), np.asarray(ref_lp),
                               rtol=1e-5, atol=1e-5)
    np.testing.assert_allclose(np.asarray(hid32), np.asarray(ref_h),
                               rtol=1e-5, atol=1e-5)
    np.testing.assert_allclose(np.asarray(logp16), np.asarray(ref_lp),
                               rtol=5e-2, atol=5e-2)
    np.testing.assert_allclose(np.asarray(hid16), np.asarray(ref_h),
                               rtol=5e-2, atol=5e-2)

    print("KERNEL_OK")
</pallas_src>

<mosaic_0001>
module attributes {stable_mosaic.version = 11 : i64} {
  func.func @kernel(%arg0: memref<64x16xf32, #tpu.memory_space<vmem>>, %arg1: memref<8x128xf32, #tpu.memory_space<vmem>>, %arg2: memref<16x384xf32, #tpu.memory_space<vmem>>, %arg3: memref<128x384xf32, #tpu.memory_space<vmem>>, %arg4: memref<1x384xf32, #tpu.memory_space<vmem>>, %arg5: memref<1x128xf32, #tpu.memory_space<vmem>>, %arg6: memref<128x128xf32, #tpu.memory_space<vmem>>, %arg7: memref<1x128xf32, #tpu.memory_space<vmem>>, %arg8: memref<8x128xf32, #tpu.memory_space<vmem>>, %arg9: memref<8x128xf32, #tpu.memory_space<vmem>>, %arg10: memref<8x8x384xf32, #tpu.memory_space<vmem>>) attributes {dimension_semantics = [], scalar_prefetch = 0 : i64, scratch_operands = 1 : i64, tpu.core_type = #tpu.core_type<tc>} {
    %c0 = arith.constant 0 : index
    %c0_0 = arith.constant 0 : index
    %0 = vector.load %arg0[%c0, %c0_0] : memref<64x16xf32, #tpu.memory_space<vmem>>, vector<64x16xf32>
    %c0_1 = arith.constant 0 : index
    %c0_2 = arith.constant 0 : index
    %1 = vector.load %arg2[%c0_1, %c0_2] : memref<16x384xf32, #tpu.memory_space<vmem>>, vector<16x384xf32>
    %cst = arith.constant dense<0.000000e+00> : vector<64x384xf32>
    %2 = tpu.matmul %0, %1, %cst {dimension_numbers = #tpu.dot_dimension_numbers<[1], [0], [0], [1], [0, 0, 1, 1], [], []>} : vector<64x16xf32>, vector<16x384xf32>, vector<64x384xf32> -> vector<64x384xf32>
    %c0_3 = arith.constant 0 : index
    %c0_4 = arith.constant 0 : index
    %3 = vector.load %arg4[%c0_3, %c0_4] : memref<1x384xf32, #tpu.memory_space<vmem>>, vector<1x384xf32>
    %4 = vector.broadcast %3 : vector<1x384xf32> to vector<64x384xf32>
    %5 = arith.addf %2, %4 : vector<64x384xf32>
    %6 = vector.extract_strided_slice %5 {offsets = [0, 0], sizes = [8, 384], strides = [1, 1]} : vector<64x384xf32> to vector<8x384xf32>
    %c0_5 = arith.constant 0 : index
    %c0_6 = arith.constant 0 : index
    %c0_7 = arith.constant 0 : index
    %7 = vector.load %arg10[%c0_5, %c0_6, %c0_7] : memref<8x8x384xf32, #tpu.memory_space<vmem>>, vector<1x8x384xf32>
    %8 = vector.shape_cast %7 : vector<1x8x384xf32> to vector<8x384xf32>
    %9 = vector.shape_cast %6 : vector<8x384xf32> to vector<1x8x384xf32>
    tpu.vector_store %arg10[%c0_5, %c0_6, %c0_7], %9 {strides = array<i32>} : memref<8x8x384xf32, #tpu.memory_space<vmem>>, vector<1x8x384xf32>,
    %10 = vector.extract_strided_slice %5 {offsets = [8, 0], sizes = [8, 384], strides = [1, 1]} : vector<64x384xf32> to vector<8x384xf32>
    %c1 = arith.constant 1 : index
    %c0_8 = arith.constant 0 : index
    %c0_9 = arith.constant 0 : index
    %11 = vector.load %arg10[%c1, %c0_8, %c0_9] : memref<8x8x384xf32, #tpu.memory_space<vmem>>, vector<1x8x384xf32>
    %12 = vector.shape_cast %11 : vector<1x8x384xf32> to vector<8x384xf32>
    %13 = vector.shape_cast %10 : vector<8x384xf32> to vector<1x8x384xf32>
    tpu.vector_store %arg10[%c1, %c0_8, %c0_9], %13 {strides = array<i32>} : memref<8x8x384xf32, #tpu.memory_space<vmem>>, vector<1x8x384xf32>,
    %14 = vector.extract_strided_slice %5 {offsets = [16, 0], sizes = [8, 384], strides = [1, 1]} : vector<64x384xf32> to vector<8x384xf32>
    %c2 = arith.constant 2 : index
    %c0_10 = arith.constant 0 : index
    %c0_11 = arith.constant 0 : index
    %15 = vector.load %arg10[%c2, %c0_10, %c0_11] : memref<8x8x384xf32, #tpu.memory_space<vmem>>, vector<1x8x384xf32>
    %16 = vector.shape_cast %15 : vector<1x8x384xf32> to vector<8x384xf32>
    %17 = vector.shape_cast %14 : vector<8x384xf32> to vector<1x8x384xf32>
    tpu.vector_store %arg10[%c2, %c0_10, %c0_11], %17 {strides = array<i32>} : memref<8x8x384xf32, #tpu.memory_space<vmem>>, vector<1x8x384xf32>,
    %18 = vector.extract_strided_slice %5 {offsets = [24, 0], sizes = [8, 384], strides = [1, 1]} : vector<64x384xf32> to vector<8x384xf32>
    %c3 = arith.constant 3 : index
    %c0_12 = arith.constant 0 : index
    %c0_13 = arith.constant 0 : index
    %19 = vector.load %arg10[%c3, %c0_12, %c0_13] : memref<8x8x384xf32, #tpu.memory_space<vmem>>, vector<1x8x384xf32>
    %20 = vector.shape_cast %19 : vector<1x8x384xf32> to vector<8x384xf32>
    %21 = vector.shape_cast %18 : vector<8x384xf32> to vector<1x8x384xf32>
    tpu.vector_store %arg10[%c3, %c0_12, %c0_13], %21 {strides = array<i32>} : memref<8x8x384xf32, #tpu.memory_space<vmem>>, vector<1x8x384xf32>,
    %22 = vector.extract_strided_slice %5 {offsets = [32, 0], sizes = [8, 384], strides = [1, 1]} : vector<64x384xf32> to vector<8x384xf32>
    %c4 = arith.constant 4 : index
    %c0_14 = arith.constant 0 : index
    %c0_15 = arith.constant 0 : index
    %23 = vector.load %arg10[%c4, %c0_14, %c0_15] : memref<8x8x384xf32, #tpu.memory_space<vmem>>, vector<1x8x384xf32>
    %24 = vector.shape_cast %23 : vector<1x8x384xf32> to vector<8x384xf32>
    %25 = vector.shape_cast %22 : vector<8x384xf32> to vector<1x8x384xf32>
    tpu.vector_store %arg10[%c4, %c0_14, %c0_15], %25 {strides = array<i32>} : memref<8x8x384xf32, #tpu.memory_space<vmem>>, vector<1x8x384xf32>,
    %26 = vector.extract_strided_slice %5 {offsets = [40, 0], sizes = [8, 384], strides = [1, 1]} : vector<64x384xf32> to vector<8x384xf32>
    %c5 = arith.constant 5 : index
    %c0_16 = arith.constant 0 : index
    %c0_17 = arith.constant 0 : index
    %27 = vector.load %arg10[%c5, %c0_16, %c0_17] : memref<8x8x384xf32, #tpu.memory_space<vmem>>, vector<1x8x384xf32>
    %28 = vector.shape_cast %27 : vector<1x8x384xf32> to vector<8x384xf32>
    %29 = vector.shape_cast %26 : vector<8x384xf32> to vector<1x8x384xf32>
    tpu.vector_store %arg10[%c5, %c0_16, %c0_17], %29 {strides = array<i32>} : memref<8x8x384xf32, #tpu.memory_space<vmem>>, vector<1x8x384xf32>,
    %30 = vector.extract_strided_slice %5 {offsets = [48, 0], sizes = [8, 384], strides = [1, 1]} : vector<64x384xf32> to vector<8x384xf32>
    %c6 = arith.constant 6 : index
    %c0_18 = arith.constant 0 : index
    %c0_19 = arith.constant 0 : index
    %31 = vector.load %arg10[%c6, %c0_18, %c0_19] : memref<8x8x384xf32, #tpu.memory_space<vmem>>, vector<1x8x384xf32>
    %32 = vector.shape_cast %31 : vector<1x8x384xf32> to vector<8x384xf32>
    %33 = vector.shape_cast %30 : vector<8x384xf32> to vector<1x8x384xf32>
    tpu.vector_store %arg10[%c6, %c0_18, %c0_19], %33 {strides = array<i32>} : memref<8x8x384xf32, #tpu.memory_space<vmem>>, vector<1x8x384xf32>,
    %34 = vector.extract_strided_slice %5 {offsets = [56, 0], sizes = [8, 384], strides = [1, 1]} : vector<64x384xf32> to vector<8x384xf32>
    %c7 = arith.constant 7 : index
    %c0_20 = arith.constant 0 : index
    %c0_21 = arith.constant 0 : index
    %35 = vector.load %arg10[%c7, %c0_20, %c0_21] : memref<8x8x384xf32, #tpu.memory_space<vmem>>, vector<1x8x384xf32>
    %36 = vector.shape_cast %35 : vector<1x8x384xf32> to vector<8x384xf32>
    %37 = vector.shape_cast %34 : vector<8x384xf32> to vector<1x8x384xf32>
    tpu.vector_store %arg10[%c7, %c0_20, %c0_21], %37 {strides = array<i32>} : memref<8x8x384xf32, #tpu.memory_space<vmem>>, vector<1x8x384xf32>,
    %c0_22 = arith.constant 0 : index
    %c0_23 = arith.constant 0 : index
    %38 = vector.load %arg3[%c0_22, %c0_23] : memref<128x384xf32, #tpu.memory_space<vmem>>, vector<128x384xf32>
    %c0_24 = arith.constant 0 : index
    %c0_25 = arith.constant 0 : index
    %39 = vector.load %arg5[%c0_24, %c0_25] : memref<1x128xf32, #tpu.memory_space<vmem>>, vector<1x128xf32>
    %40 = vector.shape_cast %39 : vector<1x128xf32> to vector<1x128xf32>
    %41 = vector.broadcast %40 : vector<1x128xf32> to vector<8x128xf32>
    %c0_26 = arith.constant 0 : index
    %c0_27 = arith.constant 0 : index
    %42 = vector.load %arg1[%c0_26, %c0_27] : memref<8x128xf32, #tpu.memory_space<vmem>>, vector<8x128xf32>
    %c0_i32 = arith.constant 0 : i32
    %43 = arith.index_cast %c0_i32 : i32 to index
    %c0_28 = arith.constant 0 : index
    %c0_29 = arith.constant 0 : index
    %44 = vector.load %arg10[%43, %c0_28, %c0_29] : memref<8x8x384xf32, #tpu.memory_space<vmem>>, vector<1x8x384xf32>
    %45 = vector.shape_cast %44 : vector<1x8x384xf32> to vector<8x384xf32>
    %cst_30 = arith.constant dense<0.000000e+00> : vector<8x384xf32>
    %46 = tpu.matmul %42, %38, %cst_30 {dimension_numbers = #tpu.dot_dimension_numbers<[1], [0], [0], [1], [0, 0, 1, 1], [], []>} : vector<8x128xf32>, vector<128x384xf32>, vector<8x384xf32> -> vector<8x384xf32>
    %47 = vector.extract_strided_slice %45 {offsets = [0, 0], sizes = [8, 128], strides = [1, 1]} : vector<8x384xf32> to vector<8x128xf32>
    %48 = vector.extract_strided_slice %46 {offsets = [0, 0], sizes = [8, 128], strides = [1, 1]} : vector<8x384xf32> to vector<8x128xf32>
    %49 = arith.addf %47, %48 : vector<8x128xf32>
    %50 = arith.negf %49 : vector<8x128xf32>
    %51 = math.exp %50 : vector<8x128xf32>
    %cst_31 = arith.constant 1.000000e+00 : f32
    %52 = vector.broadcast %cst_31 : f32 to vector<8x128xf32>
    %53 = arith.addf %52, %51 : vector<8x128xf32>
    %54 = arith.divf %52, %53 : vector<8x128xf32>
    %55 = vector.extract_strided_slice %45 {offsets = [0, 128], sizes = [8, 128], strides = [1, 1]} : vector<8x384xf32> to vector<8x128xf32>
    %56 = vector.extract_strided_slice %46 {offsets = [0, 128], sizes = [8, 128], strides = [1, 1]} : vector<8x384xf32> to vector<8x128xf32>
    %57 = arith.addf %56, %41 : vector<8x128xf32>
    %58 = arith.mulf %54, %57 : vector<8x128xf32>
    %59 = arith.addf %55, %58 : vector<8x128xf32>
    %60 = math.tanh %59 : vector<8x128xf32>
    %61 = vector.extract_strided_slice %45 {offsets = [0, 256], sizes = [8, 128], strides = [1, 1]} : vector<8x384xf32> to vector<8x128xf32>
    %62 = vector.extract_strided_slice %46 {offsets = [0, 256], sizes = [8, 128], strides = [1, 1]} : vector<8x384xf32> to vector<8x128xf32>
    %63 = arith.addf %61, %62 : vector<8x128xf32>
    %64 = arith.negf %63 : vector<8x128xf32>
    %65 = math.exp %64 : vector<8x128xf32>
    %cst_32 = arith.constant 1.000000e+00 : f32
    %66 = vector.broadcast %cst_32 : f32 to vector<8x128xf32>
    %67 = arith.addf %66, %65 : vector<8x128xf32>
    %68 = arith.divf %66, %67 : vector<8x128xf32>
    %cst_33 = arith.constant 1.000000e+00 : f32
    %69 = vector.broadcast %cst_33 : f32 to vector<8x128xf32>
    %70 = arith.subf %69, %68 : vector<8x128xf32>
    %71 = arith.mulf %70, %60 : vector<8x128xf32>
    %72 = arith.mulf %68, %42 : vector<8x128xf32>
    %73 = arith.addf %71, %72 : vector<8x128xf32>
    %c1_i32 = arith.constant 1 : i32
    %74 = arith.index_cast %c1_i32 : i32 to index
    %c0_34 = arith.constant 0 : index
    %c0_35 = arith.constant 0 : index
    %75 = vector.load %arg10[%74, %c0_34, %c0_35] : memref<8x8x384xf32, #tpu.memory_space<vmem>>, vector<1x8x384xf32>
    %76 = vector.shape_cast %75 : vector<1x8x384xf32> to vector<8x384xf32>
    %cst_36 = arith.constant dense<0.000000e+00> : vector<8x384xf32>
    %77 = tpu.matmul %73, %38, %cst_36 {dimension_numbers = #tpu.dot_dimension_numbers<[1], [0], [0], [1], [0, 0, 1, 1], [], []>} : vector<8x128xf32>, vector<128x384xf32>, vector<8x384xf32> -> vector<8x384xf32>
    %78 = vector.extract_strided_slice %76 {offsets = [0, 0], sizes = [8, 128], strides = [1, 1]} : vector<8x384xf32> to vector<8x128xf32>
    %79 = vector.extract_strided_slice %77 {offsets = [0, 0], sizes = [8, 128], strides = [1, 1]} : vector<8x384xf32> to vector<8x128xf32>
    %80 = arith.addf %78, %79 : vector<8x128xf32>
    %81 = arith.negf %80 : vector<8x128xf32>
    %82 = math.exp %81 : vector<8x128xf32>
    %cst_37 = arith.constant 1.000000e+00 : f32
    %83 = vector.broadcast %cst_37 : f32 to vector<8x128xf32>
    %84 = arith.addf %83, %82 : vector<8x128xf32>
    %85 = arith.divf %83, %84 : vector<8x128xf32>
    %86 = vector.extract_strided_slice %76 {offsets = [0, 128], sizes = [8, 128], strides = [1, 1]} : vector<8x384xf32> to vector<8x128xf32>
    %87 = vector.extract_strided_slice %77 {offsets = [0, 128], sizes = [8, 128], strides = [1, 1]} : vector<8x384xf32> to vector<8x128xf32>
    %88 = arith.addf %87, %41 : vector<8x128xf32>
    %89 = arith.mulf %85, %88 : vector<8x128xf32>
    %90 = arith.addf %86, %89 : vector<8x128xf32>
    %91 = math.tanh %90 : vector<8x128xf32>
    %92 = vector.extract_strided_slice %76 {offsets = [0, 256], sizes = [8, 128], strides = [1, 1]} : vector<8x384xf32> to vector<8x128xf32>
    %93 = vector.extract_strided_slice %77 {offsets = [0, 256], sizes = [8, 128], strides = [1, 1]} : vector<8x384xf32> to vector<8x128xf32>
    %94 = arith.addf %92, %93 : vector<8x128xf32>
    %95 = arith.negf %94 : vector<8x128xf32>
    %96 = math.exp %95 : vector<8x128xf32>
    %cst_38 = arith.constant 1.000000e+00 : f32
    %97 = vector.broadcast %cst_38 : f32 to vector<8x128xf32>
    %98 = arith.addf %97, %96 : vector<8x128xf32>
    %99 = arith.divf %97, %98 : vector<8x128xf32>
    %cst_39 = arith.constant 1.000000e+00 : f32
    %100 = vector.broadcast %cst_39 : f32 to vector<8x128xf32>
    %101 = arith.subf %100, %99 : vector<8x128xf32>
    %102 = arith.mulf %101, %91 : vector<8x128xf32>
    %103 = arith.mulf %99, %73 : vector<8x128xf32>
    %104 = arith.addf %102, %103 : vector<8x128xf32>
    %c2_i32 = arith.constant 2 : i32
    %105 = arith.index_cast %c2_i32 : i32 to index
    %c0_40 = arith.constant 0 : index
    %c0_41 = arith.constant 0 : index
    %106 = vector.load %arg10[%105, %c0_40, %c0_41] : memref<8x8x384xf32, #tpu.memory_space<vmem>>, vector<1x8x384xf32>
    %107 = vector.shape_cast %106 : vector<1x8x384xf32> to vector<8x384xf32>
    %cst_42 = arith.constant dense<0.000000e+00> : vector<8x384xf32>
    %108 = tpu.matmul %104, %38, %cst_42 {dimension_numbers = #tpu.dot_dimension_numbers<[1], [0], [0], [1], [0, 0, 1, 1], [], []>} : vector<8x128xf32>, vector<128x384xf32>, vector<8x384xf32> -> vector<8x384xf32>
    %109 = vector.extract_strided_slice %107 {offsets = [0, 0], sizes = [8, 128], strides = [1, 1]} : vector<8x384xf32> to vector<8x128xf32>
    %110 = vector.extract_strided_slice %108 {offsets = [0, 0], sizes = [8, 128], strides = [1, 1]} : vector<8x384xf32> to vector<8x128xf32>
    %111 = arith.addf %109, %110 : vector<8x128xf32>
    %112 = arith.negf %111 : vector<8x128xf32>
    %113 = math.exp %112 : vector<8x128xf32>
    %cst_43 = arith.constant 1.000000e+00 : f32
    %114 = vector.broadcast %cst_43 : f32 to vector<8x128xf32>
    %115 = arith.addf %114, %113 : vector<8x128xf32>
    %116 = arith.divf %114, %115 : vector<8x128xf32>
    %117 = vector.extract_strided_slice %107 {offsets = [0, 128], sizes = [8, 128], strides = [1, 1]} : vector<8x384xf32> to vector<8x128xf32>
    %118 = vector.extract_strided_slice %108 {offsets = [0, 128], sizes = [8, 128], strides = [1, 1]} : vector<8x384xf32> to vector<8x128xf32>
    %119 = arith.addf %118, %41 : vector<8x128xf32>
    %120 = arith.mulf %116, %119 : vector<8x128xf32>
    %121 = arith.addf %117, %120 : vector<8x128xf32>
    %122 = math.tanh %121 : vector<8x128xf32>
    %123 = vector.extract_strided_slice %107 {offsets = [0, 256], sizes = [8, 128], strides = [1, 1]} : vector<8x384xf32> to vector<8x128xf32>
    %124 = vector.extract_strided_slice %108 {offsets = [0, 256], sizes = [8, 128], strides = [1, 1]} : vector<8x384xf32> to vector<8x128xf32>
    %125 = arith.addf %123, %124 : vector<8x128xf32>
    %126 = arith.negf %125 : vector<8x128xf32>
    %127 = math.exp %126 : vector<8x128xf32>
    %cst_44 = arith.constant 1.000000e+00 : f32
    %128 = vector.broadcast %cst_44 : f32 to vector<8x128xf32>
    %129 = arith.addf %128, %127 : vector<8x128xf32>
    %130 = arith.divf %128, %129 : vector<8x128xf32>
    %cst_45 = arith.constant 1.000000e+00 : f32
    %131 = vector.broadcast %cst_45 : f32 to vector<8x128xf32>
    %132 = arith.subf %131, %130 : vector<8x128xf32>
    %133 = arith.mulf %132, %122 : vector<8x128xf32>
    %134 = arith.mulf %130, %104 : vector<8x128xf32>
    %135 = arith.addf %133, %134 : vector<8x128xf32>
    %c3_i32 = arith.constant 3 : i32
    %136 = arith.index_cast %c3_i32 : i32 to index
    %c0_46 = arith.constant 0 : index
    %c0_47 = arith.constant 0 : index
    %137 = vector.load %arg10[%136, %c0_46, %c0_47] : memref<8x8x384xf32, #tpu.memory_space<vmem>>, vector<1x8x384xf32>
    %138 = vector.shape_cast %137 : vector<1x8x384xf32> to vector<8x384xf32>
    %cst_48 = arith.constant dense<0.000000e+00> : vector<8x384xf32>
    %139 = tpu.matmul %135, %38, %cst_48 {dimension_numbers = #tpu.dot_dimension_numbers<[1], [0], [0], [1], [0, 0, 1, 1], [], []>} : vector<8x128xf32>, vector<128x384xf32>, vector<8x384xf32> -> vector<8x384xf32>
    %140 = vector.extract_strided_slice %138 {offsets = [0, 0], sizes = [8, 128], strides = [1, 1]} : vector<8x384xf32> to vector<8x128xf32>
    %141 = vector.extract_strided_slice %139 {offsets = [0, 0], sizes = [8, 128], strides = [1, 1]} : vector<8x384xf32> to vector<8x128xf32>
    %142 = arith.addf %140, %141 : vector<8x128xf32>
    %143 = arith.negf %142 : vector<8x128xf32>
    %144 = math.exp %143 : vector<8x128xf32>
    %cst_49 = arith.constant 1.000000e+00 : f32
    %145 = vector.broadcast %cst_49 : f32 to vector<8x128xf32>
    %146 = arith.addf %145, %144 : vector<8x128xf32>
    %147 = arith.divf %145, %146 : vector<8x128xf32>
    %148 = vector.extract_strided_slice %138 {offsets = [0, 128], sizes = [8, 128], strides = [1, 1]} : vector<8x384xf32> to vector<8x128xf32>
    %149 = vector.extract_strided_slice %139 {offsets = [0, 128], sizes = [8, 128], strides = [1, 1]} : vector<8x384xf32> to vector<8x128xf32>
    %150 = arith.addf %149, %41 : vector<8x128xf32>
    %151 = arith.mulf %147, %150 : vector<8x128xf32>
    %152 = arith.addf %148, %151 : vector<8x128xf32>
    %153 = math.tanh %152 : vector<8x128xf32>
    %154 = vector.extract_strided_slice %138 {offsets = [0, 256], sizes = [8, 128], strides = [1, 1]} : vector<8x384xf32> to vector<8x128xf32>
    %155 = vector.extract_strided_slice %139 {offsets = [0, 256], sizes = [8, 128], strides = [1, 1]} : vector<8x384xf32> to vector<8x128xf32>
    %156 = arith.addf %154, %155 : vector<8x128xf32>
    %157 = arith.negf %156 : vector<8x128xf32>
    %158 = math.exp %157 : vector<8x128xf32>
    %cst_50 = arith.constant 1.000000e+00 : f32
    %159 = vector.broadcast %cst_50 : f32 to vector<8x128xf32>
    %160 = arith.addf %159, %158 : vector<8x128xf32>
    %161 = arith.divf %159, %160 : vector<8x128xf32>
    %cst_51 = arith.constant 1.000000e+00 : f32
    %162 = vector.broadcast %cst_51 : f32 to vector<8x128xf32>
    %163 = arith.subf %162, %161 : vector<8x128xf32>
    %164 = arith.mulf %163, %153 : vector<8x128xf32>
    %165 = arith.mulf %161, %135 : vector<8x128xf32>
    %166 = arith.addf %164, %165 : vector<8x128xf32>
    %c4_i32 = arith.constant 4 : i32
    %167 = arith.index_cast %c4_i32 : i32 to index
    %c0_52 = arith.constant 0 : index
    %c0_53 = arith.constant 0 : index
    %168 = vector.load %arg10[%167, %c0_52, %c0_53] : memref<8x8x384xf32, #tpu.memory_space<vmem>>, vector<1x8x384xf32>
    %169 = vector.shape_cast %168 : vector<1x8x384xf32> to vector<8x384xf32>
    %cst_54 = arith.constant dense<0.000000e+00> : vector<8x384xf32>
    %170 = tpu.matmul %166, %38, %cst_54 {dimension_numbers = #tpu.dot_dimension_numbers<[1], [0], [0], [1], [0, 0, 1, 1], [], []>} : vector<8x128xf32>, vector<128x384xf32>, vector<8x384xf32> -> vector<8x384xf32>
    %171 = vector.extract_strided_slice %169 {offsets = [0, 0], sizes = [8, 128], strides = [1, 1]} : vector<8x384xf32> to vector<8x128xf32>
    %172 = vector.extract_strided_slice %170 {offsets = [0, 0], sizes = [8, 128], strides = [1, 1]} : vector<8x384xf32> to vector<8x128xf32>
    %173 = arith.addf %171, %172 : vector<8x128xf32>
    %174 = arith.negf %173 : vector<8x128xf32>
    %175 = math.exp %174 : vector<8x128xf32>
    %cst_55 = arith.constant 1.000000e+00 : f32
    %176 = vector.broadcast %cst_55 : f32 to vector<8x128xf32>
    %177 = arith.addf %176, %175 : vector<8x128xf32>
    %178 = arith.divf %176, %177 : vector<8x128xf32>
    %179 = vector.extract_strided_slice %169 {offsets = [0, 128], sizes = [8, 128], strides = [1, 1]} : vector<8x384xf32> to vector<8x128xf32>
    %180 = vector.extract_strided_slice %170 {offsets = [0, 128], sizes = [8, 128], strides = [1, 1]} : vector<8x384xf32> to vector<8x128xf32>
    %181 = arith.addf %180, %41 : vector<8x128xf32>
    %182 = arith.mulf %178, %181 : vector<8x128xf32>
    %183 = arith.addf %179, %182 : vector<8x128xf32>
    %184 = math.tanh %183 : vector<8x128xf32>
    %185 = vector.extract_strided_slice %169 {offsets = [0, 256], sizes = [8, 128], strides = [1, 1]} : vector<8x384xf32> to vector<8x128xf32>
    %186 = vector.extract_strided_slice %170 {offsets = [0, 256], sizes = [8, 128], strides = [1, 1]} : vector<8x384xf32> to vector<8x128xf32>
    %187 = arith.addf %185, %186 : vector<8x128xf32>
    %188 = arith.negf %187 : vector<8x128xf32>
    %189 = math.exp %188 : vector<8x128xf32>
    %cst_56 = arith.constant 1.000000e+00 : f32
    %190 = vector.broadcast %cst_56 : f32 to vector<8x128xf32>
    %191 = arith.addf %190, %189 : vector<8x128xf32>
    %192 = arith.divf %190, %191 : vector<8x128xf32>
    %cst_57 = arith.constant 1.000000e+00 : f32
    %193 = vector.broadcast %cst_57 : f32 to vector<8x128xf32>
    %194 = arith.subf %193, %192 : vector<8x128xf32>
    %195 = arith.mulf %194, %184 : vector<8x128xf32>
    %196 = arith.mulf %192, %166 : vector<8x128xf32>
    %197 = arith.addf %195, %196 : vector<8x128xf32>
    %c5_i32 = arith.constant 5 : i32
    %198 = arith.index_cast %c5_i32 : i32 to index
    %c0_58 = arith.constant 0 : index
    %c0_59 = arith.constant 0 : index
    %199 = vector.load %arg10[%198, %c0_58, %c0_59] : memref<8x8x384xf32, #tpu.memory_space<vmem>>, vector<1x8x384xf32>
    %200 = vector.shape_cast %199 : vector<1x8x384xf32> to vector<8x384xf32>
    %cst_60 = arith.constant dense<0.000000e+00> : vector<8x384xf32>
    %201 = tpu.matmul %197, %38, %cst_60 {dimension_numbers = #tpu.dot_dimension_numbers<[1], [0], [0], [1], [0, 0, 1, 1], [], []>} : vector<8x128xf32>, vector<128x384xf32>, vector<8x384xf32> -> vector<8x384xf32>
    %202 = vector.extract_strided_slice %200 {offsets = [0, 0], sizes = [8, 128], strides = [1, 1]} : vector<8x384xf32> to vector<8x128xf32>
    %203 = vector.extract_strided_slice %201 {offsets = [0, 0], sizes = [8, 128], strides = [1, 1]} : vector<8x384xf32> to vector<8x128xf32>
    %204 = arith.addf %202, %203 : vector<8x128xf32>
    %205 = arith.negf %204 : vector<8x128xf32>
    %206 = math.exp %205 : vector<8x128xf32>
    %cst_61 = arith.constant 1.000000e+00 : f32
    %207 = vector.broadcast %cst_61 : f32 to vector<8x128xf32>
    %208 = arith.addf %207, %206 : vector<8x128xf32>
    %209 = arith.divf %207, %208 : vector<8x128xf32>
    %210 = vector.extract_strided_slice %200 {offsets = [0, 128], sizes = [8, 128], strides = [1, 1]} : vector<8x384xf32> to vector<8x128xf32>
    %211 = vector.extract_strided_slice %201 {offsets = [0, 128], sizes = [8, 128], strides = [1, 1]} : vector<8x384xf32> to vector<8x128xf32>
    %212 = arith.addf %211, %41 : vector<8x128xf32>
    %213 = arith.mulf %209, %212 : vector<8x128xf32>
    %214 = arith.addf %210, %213 : vector<8x128xf32>
    %215 = math.tanh %214 : vector<8x128xf32>
    %216 = vector.extract_strided_slice %200 {offsets = [0, 256], sizes = [8, 128], strides = [1, 1]} : vector<8x384xf32> to vector<8x128xf32>
    %217 = vector.extract_strided_slice %201 {offsets = [0, 256], sizes = [8, 128], strides = [1, 1]} : vector<8x384xf32> to vector<8x128xf32>
    %218 = arith.addf %216, %217 : vector<8x128xf32>
    %219 = arith.negf %218 : vector<8x128xf32>
    %220 = math.exp %219 : vector<8x128xf32>
    %cst_62 = arith.constant 1.000000e+00 : f32
    %221 = vector.broadcast %cst_62 : f32 to vector<8x128xf32>
    %222 = arith.addf %221, %220 : vector<8x128xf32>
    %223 = arith.divf %221, %222 : vector<8x128xf32>
    %cst_63 = arith.constant 1.000000e+00 : f32
    %224 = vector.broadcast %cst_63 : f32 to vector<8x128xf32>
    %225 = arith.subf %224, %223 : vector<8x128xf32>
    %226 = arith.mulf %225, %215 : vector<8x128xf32>
    %227 = arith.mulf %223, %197 : vector<8x128xf32>
    %228 = arith.addf %226, %227 : vector<8x128xf32>
    %c6_i32 = arith.constant 6 : i32
    %229 = arith.index_cast %c6_i32 : i32 to index
    %c0_64 = arith.constant 0 : index
    %c0_65 = arith.constant 0 : index
    %230 = vector.load %arg10[%229, %c0_64, %c0_65] : memref<8x8x384xf32, #tpu.memory_space<vmem>>, vector<1x8x384xf32>
    %231 = vector.shape_cast %230 : vector<1x8x384xf32> to vector<8x384xf32>
    %cst_66 = arith.constant dense<0.000000e+00> : vector<8x384xf32>
    %232 = tpu.matmul %228, %38, %cst_66 {dimension_numbers = #tpu.dot_dimension_numbers<[1], [0], [0], [1], [0, 0, 1, 1], [], []>} : vector<8x128xf32>, vector<128x384xf32>, vector<8x384xf32> -> vector<8x384xf32>
    %233 = vector.extract_strided_slice %231 {offsets = [0, 0], sizes = [8, 128], strides = [1, 1]} : vector<8x384xf32> to vector<8x128xf32>
    %234 = vector.extract_strided_slice %232 {offsets = [0, 0], sizes = [8, 128], strides = [1, 1]} : vector<8x384xf32> to vector<8x128xf32>
    %235 = arith.addf %233, %234 : vector<8x128xf32>
    %236 = arith.negf %235 : vector<8x128xf32>
    %237 = math.exp %236 : vector<8x128xf32>
    %cst_67 = arith.constant 1.000000e+00 : f32
    %238 = vector.broadcast %cst_67 : f32 to vector<8x128xf32>
    %239 = arith.addf %238, %237 : vector<8x128xf32>
    %240 = arith.divf %238, %239 : vector<8x128xf32>
    %241 = vector.extract_strided_slice %231 {offsets = [0, 128], sizes = [8, 128], strides = [1, 1]} : vector<8x384xf32> to vector<8x128xf32>
    %242 = vector.extract_strided_slice %232 {offsets = [0, 128], sizes = [8, 128], strides = [1, 1]} : vector<8x384xf32> to vector<8x128xf32>
    %243 = arith.addf %242, %41 : vector<8x128xf32>
    %244 = arith.mulf %240, %243 : vector<8x128xf32>
    %245 = arith.addf %241, %244 : vector<8x128xf32>
    %246 = math.tanh %245 : vector<8x128xf32>
    %247 = vector.extract_strided_slice %231 {offsets = [0, 256], sizes = [8, 128], strides = [1, 1]} : vector<8x384xf32> to vector<8x128xf32>
    %248 = vector.extract_strided_slice %232 {offsets = [0, 256], sizes = [8, 128], strides = [1, 1]} : vector<8x384xf32> to vector<8x128xf32>
    %249 = arith.addf %247, %248 : vector<8x128xf32>
    %250 = arith.negf %249 : vector<8x128xf32>
    %251 = math.exp %250 : vector<8x128xf32>
    %cst_68 = arith.constant 1.000000e+00 : f32
    %252 = vector.broadcast %cst_68 : f32 to vector<8x128xf32>
    %253 = arith.addf %252, %251 : vector<8x128xf32>
    %254 = arith.divf %252, %253 : vector<8x128xf32>
    %cst_69 = arith.constant 1.000000e+00 : f32
    %255 = vector.broadcast %cst_69 : f32 to vector<8x128xf32>
    %256 = arith.subf %255, %254 : vector<8x128xf32>
    %257 = arith.mulf %256, %246 : vector<8x128xf32>
    %258 = arith.mulf %254, %228 : vector<8x128xf32>
    %259 = arith.addf %257, %258 : vector<8x128xf32>
    %c7_i32 = arith.constant 7 : i32
    %260 = arith.index_cast %c7_i32 : i32 to index
    %c0_70 = arith.constant 0 : index
    %c0_71 = arith.constant 0 : index
    %261 = vector.load %arg10[%260, %c0_70, %c0_71] : memref<8x8x384xf32, #tpu.memory_space<vmem>>, vector<1x8x384xf32>
    %262 = vector.shape_cast %261 : vector<1x8x384xf32> to vector<8x384xf32>
    %cst_72 = arith.constant dense<0.000000e+00> : vector<8x384xf32>
    %263 = tpu.matmul %259, %38, %cst_72 {dimension_numbers = #tpu.dot_dimension_numbers<[1], [0], [0], [1], [0, 0, 1, 1], [], []>} : vector<8x128xf32>, vector<128x384xf32>, vector<8x384xf32> -> vector<8x384xf32>
    %264 = vector.extract_strided_slice %262 {offsets = [0, 0], sizes = [8, 128], strides = [1, 1]} : vector<8x384xf32> to vector<8x128xf32>
    %265 = vector.extract_strided_slice %263 {offsets = [0, 0], sizes = [8, 128], strides = [1, 1]} : vector<8x384xf32> to vector<8x128xf32>
    %266 = arith.addf %264, %265 : vector<8x128xf32>
    %267 = arith.negf %266 : vector<8x128xf32>
    %268 = math.exp %267 : vector<8x128xf32>
    %cst_73 = arith.constant 1.000000e+00 : f32
    %269 = vector.broadcast %cst_73 : f32 to vector<8x128xf32>
    %270 = arith.addf %269, %268 : vector<8x128xf32>
    %271 = arith.divf %269, %270 : vector<8x128xf32>
    %272 = vector.extract_strided_slice %262 {offsets = [0, 128], sizes = [8, 128], strides = [1, 1]} : vector<8x384xf32> to vector<8x128xf32>
    %273 = vector.extract_strided_slice %263 {offsets = [0, 128], sizes = [8, 128], strides = [1, 1]} : vector<8x384xf32> to vector<8x128xf32>
    %274 = arith.addf %273, %41 : vector<8x128xf32>
    %275 = arith.mulf %271, %274 : vector<8x128xf32>
    %276 = arith.addf %272, %275 : vector<8x128xf32>
    %277 = math.tanh %276 : vector<8x128xf32>
    %278 = vector.extract_strided_slice %262 {offsets = [0, 256], sizes = [8, 128], strides = [1, 1]} : vector<8x384xf32> to vector<8x128xf32>
    %279 = vector.extract_strided_slice %263 {offsets = [0, 256], sizes = [8, 128], strides = [1, 1]} : vector<8x384xf32> to vector<8x128xf32>
    %280 = arith.addf %278, %279 : vector<8x128xf32>
    %281 = arith.negf %280 : vector<8x128xf32>
    %282 = math.exp %281 : vector<8x128xf32>
    %cst_74 = arith.constant 1.000000e+00 : f32
    %283 = vector.broadcast %cst_74 : f32 to vector<8x128xf32>
    %284 = arith.addf %283, %282 : vector<8x128xf32>
    %285 = arith.divf %283, %284 : vector<8x128xf32>
    %cst_75 = arith.constant 1.000000e+00 : f32
    %286 = vector.broadcast %cst_75 : f32 to vector<8x128xf32>
    %287 = arith.subf %286, %285 : vector<8x128xf32>
    %288 = arith.mulf %287, %277 : vector<8x128xf32>
    %289 = arith.mulf %285, %259 : vector<8x128xf32>
    %290 = arith.addf %288, %289 : vector<8x128xf32>
    %c8_i32 = arith.constant 8 : i32
    %c0_76 = arith.constant 0 : index
    %c0_77 = arith.constant 0 : index
    %291 = vector.load %arg9[%c0_76, %c0_77] : memref<8x128xf32, #tpu.memory_space<vmem>>, vector<8x128xf32>
    tpu.vector_store %arg9[%c0_76, %c0_77], %290 {strides = array<i32>} : memref<8x128xf32, #tpu.memory_space<vmem>>, vector<8x128xf32>,
    %c0_78 = arith.constant 0 : index
    %c0_79 = arith.constant 0 : index
    %292 = vector.load %arg6[%c0_78, %c0_79] : memref<128x128xf32, #tpu.memory_space<vmem>>, vector<128x128xf32>
    %cst_80 = arith.constant dense<0.000000e+00> : vector<8x128xf32>
    %293 = tpu.matmul %290, %292, %cst_80 {dimension_numbers = #tpu.dot_dimension_numbers<[1], [0], [0], [1], [0, 0, 1, 1], [], []>} : vector<8x128xf32>, vector<128x128xf32>, vector<8x128xf32> -> vector<8x128xf32>
    %c0_81 = arith.constant 0 : index
    %c0_82 = arith.constant 0 : index
    %294 = vector.load %arg7[%c0_81, %c0_82] : memref<1x128xf32, #tpu.memory_space<vmem>>, vector<1x128xf32>
    %295 = vector.broadcast %294 : vector<1x128xf32> to vector<8x128xf32>
    %296 = arith.addf %293, %295 : vector<8x128xf32>
    %cst_83 = arith.constant dense<0xFF800000> : vector<8xf32>
    %297 = vector.multi_reduction <maximumf>, %296, %cst_83 [1] : vector<8x128xf32> to vector<8xf32>
    %298 = vector.shape_cast %297 : vector<8xf32> to vector<8x1xf32>
    %299 = vector.broadcast %298 : vector<8x1xf32> to vector<8x128xf32>
    %300 = arith.subf %296, %299 : vector<8x128xf32>
    %301 = math.exp %300 : vector<8x128xf32>
    %cst_84 = arith.constant dense<0.000000e+00> : vector<8xf32>
    %302 = vector.multi_reduction <add>, %301, %cst_84 [1] : vector<8x128xf32> to vector<8xf32>
    %303 = vector.shape_cast %302 : vector<8xf32> to vector<8x1xf32>
    %304 = math.log %303 : vector<8x1xf32>
    %305 = vector.broadcast %304 : vector<8x1xf32> to vector<8x128xf32>
    %306 = arith.subf %300, %305 : vector<8x128xf32>
    %c0_85 = arith.constant 0 : index
    %c0_86 = arith.constant 0 : index
    %307 = vector.load %arg8[%c0_85, %c0_86] : memref<8x128xf32, #tpu.memory_space<vmem>>, vector<8x128xf32>
    tpu.vector_store %arg8[%c0_85, %c0_86], %306 {strides = array<i32>} : memref<8x128xf32, #tpu.memory_space<vmem>>, vector<8x128xf32>,
    return
  }
}

</mosaic_0001>

<bundles_post_ra>
// kernel: rnn_forward.1
= control target key start
LH: loop header
LB: loop body
LE: loop exit
PB: predicated region body
PF: predicated region fallthrough
CT: control target
= control target key end

     0   :  { %v3845_v3 = vmov 0.0   ;;  %vm62_vm0 = vcmask 130048   ;;  %vm2497_vm1 = vmmov 0   ;;  %s3835_s2 = inlined_call_operand.vmem [shape: f32[16,384], index: 2, kind: input, shape index: {}]   ;;  %s3836_s0 = inlined_call_operand.vmem [shape: f32[64,16], index: 0, kind: input, shape index: {}]   ;;  %s3837_s3 = inlined_call_operand.vmem [shape: f32[128,384], index: 3, kind: input, shape index: {}]   ;;  %s3838_s1 = inlined_call_operand.vmem [shape: f32[8,128], index: 1, kind: input, shape index: {}]   ;;  %s3839_s4 = inlined_call_operand.vmem [shape: f32[1,384], index: 4, kind: input, shape index: {}]   ;;  %s3840_s5 = inlined_call_operand.vmem [shape: f32[1,128], index: 5, kind: input, shape index: {}]   ;;  %s3841_s6 = inlined_call_operand.vmem [shape: f32[128,128], index: 6, kind: input, shape index: {}]   ;;  %s3842_s9 = inlined_call_operand.vmem [shape: f32[8,128], index: 9, kind: output, shape index: {1}]   ;;  %s3843_s7 = inlined_call_operand.vmem [shape: f32[1,128], index: 7, kind: input, shape index: {}]   ;;  %s3844_s8 = inlined_call_operand.vmem [shape: f32[8,128], index: 8, kind: output, shape index: {0}]  }
   0x1   :  { %v43_v0 = vld [vmem:[%s3835_s2 + $0x20] sm:$0xff]  ;;  %v44_v1 = vld [vmem:[%s3835_s2 + $0x28] sm:$0xff]  ;;  %v42_v2 = vld [vmem:[%s3835_s2 + $0x18] sm:$0xff]  ;;  %151 = vmatprep.mubr.f32.mxu0 %v3845_v3 }
   0x2   :  { %115 = vmatprep.subr.mxu0 %v43_v0  ;;  %2030 = vmatprep.subr.mxu1 %v44_v1  ;;  %v40_v4 = vld [vmem:[%s3835_s2 + $0x8] sm:$0xff]  ;;  %v41_v5 = vld [vmem:[%s3835_s2 + $0x10] sm:$0xff]  ;;  %v39_v6 = vld [vmem:[%s3835_s2] sm:$0xff]  ;;  %v47_v0 = vlaneseq }
   0x3   :  { %116 = vmatpush1.msra.mxu0 %v42_v2  ;;  %2031 = vmatpush3.msra.mxu1 %v44_v1  ;;  %v31_v7 = vld [vmem:[%s3836_s0] sm:$0xff]  ;;  %v2573_v8 = vld [vmem:[%s3837_s3 + $0x170] sm:$0xff]  ;;  %v32_v9 = vld [vmem:[%s3836_s0 + $0x8] sm:$0xff] }
   0x4   :  { %117 = vmatprep.subr.mxu0 %v40_v4  ;;  %2032 = vmatprep.subr.mxu1 %v41_v5  ;;  %3870 = vst [vmem:[#allocation3_spill] sm:$0xff] %v2573_v8  ;;  %v2581_v10 = vld [vmem:[%s3837_s3 + $0x168] sm:$0xff]  ;;  %v2588_v11 = vld [vmem:[%s3837_s3 + $0x178] sm:$0xff]  ;;  %v2602_v13 = vld [vmem:[%s3837_s3 + $0x150] sm:$0xff]  ;;  %v48_v1 = vshrl.u32 %v47_v0, 7 }
   0x5   :  { %118 = vmatpush1.msra.mxu0 %v39_v6  ;;  %2033 = vmatpush3.msra.mxu1 %v41_v5  ;;  %v2593_v12 = vld [vmem:[%s3837_s3 + $0x158] sm:$0xff]  ;;  %v2607_v14 = vld [vmem:[%s3837_s3 + $0x160] sm:$0xff]  ;;  %v2628_v17 = vld [vmem:[%s3837_s3 + $0x148] sm:$0xff] }
   0x6   :  { %1833 = vmatmul.mubr.msk.f32.vlgmr.msra.gmra.mxu0 %vm62_vm0, %v31_v7  ;;  %2034 = vmatprep.mubr.msk.f32.mxu1 %vm62_vm0, %v31_v7  ;;  %v2614_v15 = vld [vmem:[%s3837_s3 + $0x140] sm:$0xff]  ;;  %v2621_v16 = vld [vmem:[%s3837_s3 + $0x138] sm:$0xff]  ;;  %v2633_v18 = vld [vmem:[%s3837_s3 + $0x128] sm:$0xff]  ;;  %v57_v2 = vsub.s32 2, %v48_v1  ;;  %v49_v7 = vsub.s32 0, %v48_v1 }
   0x7   :  { %395 = vmatprep.subr.mxu0 %v2573_v8  ;;  %2046 = vmatprep.subr.mxu1 %v3845_v3  ;;  %v2642_v19 = vld [vmem:[%s3837_s3 + $0x120] sm:$0xff]  ;;  %v2647_v20 = vld [vmem:[%s3837_s3 + $0x130] sm:$0xff]  ;;  %v2664_v23 = vld [vmem:[%s3837_s3 + $0x108] sm:$0xff] }
   0x8   :  { %2035 = vmatmul.mubr.msk.f32.vlgmr.msra.gmra.mxu1 %vm62_vm0, %v32_v9  ;;  %396 = vmatpush1.msra.mxu0 %v2581_v10  ;;  %v33_v21 = vld [vmem:[%s3836_s0 + $0x10] sm:$0xff]  ;;  %v2671_v24 = vld [vmem:[%s3837_s3 + $0x118] sm:$0xff]  ;;  %v2690_v27 = vld [vmem:[%s3837_s3 + $0x100] sm:$0xff] }
   0x9   :  { %2047 = vmatpush3.msra.mxu1 %v2588_v11  ;;  %397 = vmatprep.subr.mxu0 %v2593_v12  ;;  %v2657_v22 = vld [vmem:[%s3837_s3 + $0x110] sm:$0xff]  ;;  %v2676_v25 = vld [vmem:[%s3837_s3 + $0xf8] sm:$0xff]  ;;  %v2700_v29 = vld [vmem:[%s3837_s3 + $0xe0] sm:$0xff] }
   0xa   :  { %2048 = vmatprep.subr.mxu1 %v3845_v3  ;;  %157 = vmatprep.mubr.f32.mxu0 %v3845_v3  ;;  %v2685_v26 = vld [vmem:[%s3837_s3 + $0xf0] sm:$0xff]  ;;  %v34_v28 = vld [vmem:[%s3836_s0 + $0x18] sm:$0xff]  ;;  %v2714_v31 = vld [vmem:[%s3837_s3 + $0xe8] sm:$0xff] }
   0xb   :  { %398 = vmatpush1.msra.mxu0 %v2602_v13  ;;  %2049 = vmatpush3.msra.mxu1 %v2607_v14  ;;  %v2707_v30 = vld [vmem:[%s3837_s3 + $0xd8] sm:$0xff]  ;;  %v2719_v32 = vld [vmem:[%s3837_s3 + $0xc8] sm:$0xff]  ;;  %v2728_v33 = vld [vmem:[%s3837_s3 + $0xc0] sm:$0xff] }
   0xc   :  { %1834 = vmatmul.mubr.msk.f32.gmra.mxu0 %vm62_vm0, %v32_v9  ;;  %399 = vmatprep.subr.mxu0 %v2614_v15  ;;  %v2733_v34 = vld [vmem:[%s3837_s3 + $0xd0] sm:$0xff]  ;;  %v35_v35 = vld [vmem:[%s3836_s0 + $0x20] sm:$0xff]  ;;  %v2750_v37 = vld [vmem:[%s3837_s3 + $0xa8] sm:$0xff] }
   0xd   :  { %2050 = vmatprep.subr.mxu1 %v3845_v3  ;;  %400 = vmatpush1.msra.mxu0 %v2621_v16  ;;  %v2743_v36 = vld [vmem:[%s3837_s3 + $0xb0] sm:$0xff]  ;;  %v2757_v38 = vld [vmem:[%s3837_s3 + $0xb8] sm:$0xff]  ;;  %v2778_v41 = vld [vmem:[%s3837_s3 + $0xa0] sm:$0xff] }
   0xe   :  { %2051 = vmatpush3.msra.mxu1 %v2628_v17  ;;  %401 = vmatprep.subr.mxu0 %v2633_v18  ;;  %v2762_v39 = vld [vmem:[%s3837_s3 + $0x98] sm:$0xff]  ;;  %v2771_v40 = vld [vmem:[%s3837_s3 + $0x90] sm:$0xff]  ;;  %v36_v42 = vld [vmem:[%s3836_s0 + $0x28] sm:$0xff] }
   0xf   :  { %2052 = vmatprep.subr.mxu1 %v3845_v3  ;;  %163 = vmatprep.mubr.f32.mxu0 %v3845_v3  ;;  %v2788_v43 = vld [vmem:[%s3837_s3 + $0x80] sm:$0xff]  ;;  %v2795_v44 = vld [vmem:[%s3837_s3 + $0x78] sm:$0xff]  ;;  %v2802_v45 = vld [vmem:[%s3837_s3 + $0x88] sm:$0xff] }
  0x10   :  { %402 = vmatpush1.msra.mxu0 %v2642_v19  ;;  %2053 = vmatpush3.msra.mxu1 %v2647_v20  ;;  %v2807_v46 = vld [vmem:[%s3837_s3 + $0x68] sm:$0xff]  ;;  %v2816_v47 = vld [vmem:[%s3837_s3 + $0x60] sm:$0xff]  ;;  %v2823_v48 = vld [vmem:[%s3837_s3 + $0x70] sm:$0xff] }
  0x11   :  { %1835 = vmatmul.mubr.msk.f32.gmra.mxu0 %vm62_vm0, %v33_v21  ;;  %403 = vmatprep.subr.mxu0 %v2657_v22  ;;  %v37_v49 = vld [vmem:[%s3836_s0 + $0x30] sm:$0xff]  ;;  %v2840_v51 = vld [vmem:[%s3837_s3 + $0x48] sm:$0xff]  ;;  %v2847_v52 = vld [vmem:[%s3837_s3 + $0x58] sm:$0xff] }
  0x12   :  { %2054 = vmatprep.subr.mxu1 %v3845_v3  ;;  %404 = vmatpush1.msra.mxu0 %v2664_v23  ;;  %v2833_v50 = vld [vmem:[%s3837_s3 + $0x50] sm:$0xff]  ;;  %v2852_v53 = vld [vmem:[%s3837_s3 + $0x38] sm:$0xff]  ;;  %v2868_v55 = vld [vmem:[%s3837_s3 + $0x40] sm:$0xff] }
  0x13   :  { %2055 = vmatpush3.msra.mxu1 %v2671_v24  ;;  %405 = vmatprep.subr.mxu0 %v2676_v25  ;;  %v2861_v54 = vld [vmem:[%s3837_s3 + $0x30] sm:$0xff]  ;;  %v38_v56 = vld [vmem:[%s3836_s0 + $0x38] sm:$0xff]  ;;  %v2878_v57 = vld [vmem:[%s3837_s3 + $0x20] sm:$0xff] }
  0x14   :  { %2056 = vmatprep.subr.mxu1 %v3845_v3  ;;  %169 = vmatprep.mubr.f32.mxu0 %v3845_v3  ;;  %3871 = vst [vmem:[#allocation4_spill] sm:$0xff] %v2878_v57  ;;  %v2885_v58 = vld [vmem:[%s3837_s3 + $0x18] sm:$0xff]  ;;  %v2892_v59 = vld [vmem:[%s3837_s3 + $0x28] sm:$0xff]  ;;  %v2904_v61 = vld [vmem:[%s3837_s3] sm:$0xff] }
  0x15   :  { %406 = vmatpush1.msra.mxu0 %v2685_v26  ;;  %2057 = vmatpush3.msra.mxu1 %v2690_v27  ;;  %3872 = vst [vmem:[#allocation5_spill] sm:$0xff] %v2885_v58  ;;  %3873 = vst [vmem:[#allocation6_spill] sm:$0xff] %v2892_v59  ;;  %v2897_v60 = vld [vmem:[%s3837_s3 + $0x8] sm:$0xff]  ;;  %v2911_v62 = vld [vmem:[%s3837_s3 + $0x10] sm:$0xff] }
  0x16   :  { %1836 = vmatmul.mubr.msk.f32.gmra.mxu0 %vm62_vm0, %v34_v28  ;;  %407 = vmatprep.subr.mxu0 %v2700_v29  ;;  %3874 = vst [vmem:[#allocation7_spill] sm:$0xff] %v2897_v60  ;;  %3875 = vst [vmem:[#allocation8_spill] sm:$0xff] %v2904_v61  ;;  %v2918_v63 = vld [vmem:[%s3838_s1] sm:$0xff] }
  0x17   :  { %2058 = vmatprep.subr.mxu1 %v3845_v3  ;;  %408 = vmatpush1.msra.mxu0 %v2707_v30  ;;  %3876 = vst [vmem:[#allocation9_spill] sm:$0xff] %v2911_v62  ;;  %v45_v4 = vld [vmem:[%s3839_s4] sm:$0x7] }
  0x18   :  { %2059 = vmatpush3.msra.mxu1 %v2714_v31  ;;  %409 = vmatprep.subr.mxu0 %v2719_v32  ;;  %v58_v5 = vrot.slane %v45_v4, %v57_v2 }
  0x19   :  { %2060 = vmatprep.subr.mxu1 %v3845_v3  ;;  %175 = vmatprep.mubr.f32.mxu0 %v3845_v3 }
  0x1a   :  { %410 = vmatpush1.msra.mxu0 %v2728_v33  ;;  %2061 = vmatpush3.msra.mxu1 %v2733_v34 }
  0x1b   :  { %1837 = vmatmul.mubr.msk.f32.gmra.mxu0 %vm62_vm0, %v35_v35  ;;  %411 = vmatprep.subr.mxu0 %v2743_v36 }
  0x1c   :  { %2062 = vmatprep.subr.mxu1 %v3845_v3  ;;  %412 = vmatpush1.msra.mxu0 %v2750_v37 }
  0x1d   :  { %2063 = vmatpush3.msra.mxu1 %v2757_v38  ;;  %413 = vmatprep.subr.mxu0 %v2762_v39 }
  0x1e   :  { %2064 = vmatprep.subr.mxu1 %v3845_v3  ;;  %181 = vmatprep.mubr.f32.mxu0 %v3845_v3 }
  0x1f   :  { %2037 = vmatprep.mubr.msk.f32.mxu1 %vm62_vm0, %v33_v21  ;;  %414 = vmatpush1.msra.mxu0 %v2771_v40 }
  0x20   :  { %2065 = vmatpush3.msra.mxu1 %v2778_v41  ;;  %1838 = vmatmul.mubr.msk.f32.gmra.mxu0 %vm62_vm0, %v36_v42 }
  0x21   :  { %2038 = vmatmul.mubr.msk.f32.gmra.mxu1 %vm62_vm0, %v34_v28  ;;  %415 = vmatprep.subr.mxu0 %v2788_v43  ;;  %v53_v28 = vsub.s32 1, %v48_v1 }
  0x22   :  { %2066 = vmatprep.subr.mxu1 %v3845_v3  ;;  %416 = vmatpush1.msra.mxu0 %v2795_v44 }
  0x23   :  { %2067 = vmatpush3.msra.mxu1 %v2802_v45  ;;  %417 = vmatprep.subr.mxu0 %v2807_v46 }
  0x24   :  { %2068 = vmatprep.subr.mxu1 %v3845_v3  ;;  %187 = vmatprep.mubr.f32.mxu0 %v3845_v3 }
  0x25   :  { %2040 = vmatprep.mubr.msk.f32.mxu1 %vm62_vm0, %v35_v35  ;;  %418 = vmatpush1.msra.mxu0 %v2816_v47 }
  0x26   :  { %2069 = vmatpush3.msra.mxu1 %v2823_v48  ;;  %1839 = vmatmul.mubr.msk.f32.gmra.mxu0 %vm62_vm0, %v37_v49 }
  0x27   :  { %2041 = vmatmul.mubr.msk.f32.gmra.mxu1 %vm62_vm0, %v36_v42  ;;  %419 = vmatprep.subr.mxu0 %v2833_v50  ;;  %v50_v42 = vrot.slane %v45_v4, %v49_v7 }
  0x28   :  { %2070 = vmatprep.subr.mxu1 %v3845_v3  ;;  %420 = vmatpush1.msra.mxu0 %v2840_v51 }
  0x29   :  { %2071 = vmatpush3.msra.mxu1 %v2847_v52  ;;  %421 = vmatprep.subr.mxu0 %v2852_v53 }
  0x2a   :  { %2072 = vmatprep.subr.mxu1 %v3845_v3  ;;  %193 = vmatprep.mubr.f32.mxu0 %v3845_v3 }
  0x2b   :  { %2043 = vmatprep.mubr.msk.f32.mxu1 %vm62_vm0, %v37_v49  ;;  %422 = vmatpush1.msra.mxu0 %v2861_v54 }
  0x2c   :  { %2073 = vmatpush3.msra.mxu1 %v2868_v55  ;;  %1840 = vmatmul.mubr.msk.f32.gmra.mxu0 %vm62_vm0, %v38_v56 }
  0x2d   :  { %2044 = vmatmul.mubr.msk.f32.gmra.mxu1 %vm62_vm0, %v38_v56  ;;  %423 = vmatprep.subr.mxu0 %v2878_v57  ;;  %v54_v56 = vrot.slane %v45_v4, %v53_v28 }
  0x2e   :  { %2074 = vmatprep.subr.mxu1 %v3845_v3  ;;  %424 = vmatpush1.msra.mxu0 %v2885_v58 }
  0x2f   :  { %2075 = vmatpush3.msra.mxu1 %v2892_v59  ;;  %425 = vmatprep.subr.mxu0 %v2897_v60 }
  0x30   :  { %2076 = vmatprep.subr.mxu1 %v3845_v3  ;;  %426 = vmatpush1.msra.mxu0 %v2904_v61 }
  0x31   :  { %459 = vmatprep.mubr.f32.mxu0 %v3845_v3  ;;  %2077 = vmatpush3.msra.mxu1 %v2911_v62 }
  0x32   :  { %2078 = vmatprep.mubr.msk.f32.mxu1 %vm2497_vm1, %v3845_v3  ;;  %460 = vmatmul.mubr.f32.vlgmr.msra.gmra.mxu0 %v2918_v63 }
  0x33   :  { %2079 = vmatmul.mubr.f32.vlgmr.msra.gmra.mxu1 %v2918_v63  ;;  %561 = vmatprep.subr.mxu0 %v2573_v8 }
  0x34   :  { %2081 = vmatprep.subr.mxu1 %v3845_v3  ;;  %562 = vmatpush1.msra.mxu0 %v2581_v10 }
  0x35   :  { %2082 = vmatpush3.msra.mxu1 %v2588_v11  ;;  %563 = vmatprep.subr.mxu0 %v2593_v12 }
  0x36   :  { %2083 = vmatprep.subr.mxu1 %v3845_v3  ;;  %564 = vmatpush1.msra.mxu0 %v2602_v13 }
  0x37   :  { %2084 = vmatpush3.msra.mxu1 %v2607_v14  ;;  %565 = vmatprep.subr.mxu0 %v2614_v15 }
  0x38   :  { %2085 = vmatprep.subr.mxu1 %v3845_v3  ;;  %566 = vmatpush1.msra.mxu0 %v2621_v16 }
  0x39   :  { %2086 = vmatpush3.msra.mxu1 %v2628_v17  ;;  %567 = vmatprep.subr.mxu0 %v2633_v18 }
  0x3a   :  { %2087 = vmatprep.subr.mxu1 %v3845_v3  ;;  %568 = vmatpush1.msra.mxu0 %v2642_v19 }
  0x3b   :  { %2088 = vmatpush3.msra.mxu1 %v2647_v20  ;;  %569 = vmatprep.subr.mxu0 %v2657_v22 }
  0x3c   :  { %2089 = vmatprep.subr.mxu1 %v3845_v3  ;;  %570 = vmatpush1.msra.mxu0 %v2664_v23 }
  0x3d   :  { %2090 = vmatpush3.msra.mxu1 %v2671_v24  ;;  %571 = vmatprep.subr.mxu0 %v2676_v25 }
  0x3e   :  { %2091 = vmatprep.subr.mxu1 %v3845_v3  ;;  %572 = vmatpush1.msra.mxu0 %v2685_v26 }
  0x3f   :  { %2092 = vmatpush3.msra.mxu1 %v2690_v27  ;;  %573 = vmatprep.subr.mxu0 %v2700_v29 }
  0x40   :  { %2093 = vmatprep.subr.mxu1 %v3845_v3  ;;  %574 = vmatpush1.msra.mxu0 %v2707_v30 }
  0x41   :  { %2094 = vmatpush3.msra.mxu1 %v2714_v31  ;;  %575 = vmatprep.subr.mxu0 %v2719_v32 }
  0x42   :  { %2095 = vmatprep.subr.mxu1 %v3845_v3  ;;  %576 = vmatpush1.msra.mxu0 %v2728_v33 }
  0x43   :  { %2096 = vmatpush3.msra.mxu1 %v2733_v34  ;;  %577 = vmatprep.subr.mxu0 %v2743_v36 }
  0x44   :  { %2097 = vmatprep.subr.mxu1 %v3845_v3  ;;  %578 = vmatpush1.msra.mxu0 %v2750_v37 }
  0x45   :  { %2098 = vmatpush3.msra.mxu1 %v2757_v38  ;;  %579 = vmatprep.subr.mxu0 %v2762_v39 }
  0x46   :  { %2099 = vmatprep.subr.mxu1 %v3845_v3  ;;  %580 = vmatpush1.msra.mxu0 %v2771_v40 }
  0x47   :  { %2100 = vmatpush3.msra.mxu1 %v2778_v41  ;;  %581 = vmatprep.subr.mxu0 %v2788_v43 }
  0x48   :  { %2101 = vmatprep.subr.mxu1 %v3845_v3  ;;  %582 = vmatpush1.msra.mxu0 %v2795_v44 }
  0x49   :  { %2102 = vmatpush3.msra.mxu1 %v2802_v45  ;;  %583 = vmatprep.subr.mxu0 %v2807_v46 }
  0x4a   :  { %2103 = vmatprep.subr.mxu1 %v3845_v3  ;;  %584 = vmatpush1.msra.mxu0 %v2816_v47 }
  0x4b   :  { %2104 = vmatpush3.msra.mxu1 %v2823_v48  ;;  %585 = vmatprep.subr.mxu0 %v2833_v50 }
  0x4c   :  { %2105 = vmatprep.subr.mxu1 %v3845_v3  ;;  %586 = vmatpush1.msra.mxu0 %v2840_v51 }
  0x4d   :  { %2106 = vmatpush3.msra.mxu1 %v2847_v52  ;;  %587 = vmatprep.subr.mxu0 %v2852_v53 }
  0x4e   :  { %2107 = vmatprep.subr.mxu1 %v3845_v3  ;;  %588 = vmatpush1.msra.mxu0 %v2861_v54 }
  0x4f   :  { %2108 = vmatpush3.msra.mxu1 %v2868_v55  ;;  %589 = vmatprep.subr.mxu0 %v2878_v57 }
  0x50   :  { %2109 = vmatprep.subr.mxu1 %v3845_v3  ;;  %590 = vmatpush1.msra.mxu0 %v2885_v58 }
  0x51   :  { %2110 = vmatpush3.msra.mxu1 %v2892_v59  ;;  %591 = vmatprep.subr.mxu0 %v2897_v60 }
  0x52   :  { %2111 = vmatprep.subr.mxu1 %v3845_v3  ;;  %592 = vmatpush1.msra.mxu0 %v2904_v61 }
  0x53   :  { %625 = vmatprep.mubr.f32.mxu0 %v3845_v3  ;;  %2112 = vmatpush3.msra.mxu1 %v2911_v62 }
  0x54   :  { %2113 = vmatprep.mubr.msk.f32.mxu1 %vm2497_vm1, %v3845_v3  ;;  %727 = vmatprep.subr.mxu0 %v2573_v8 }
  0x55   :  { %2116 = vmatprep.subr.mxu1 %v3845_v3 }
  0xc6   :  { %v153_v6 = vpop.f32.mrf.mxu0 }
  0xc8   :  { %v3000_v9 = vpop.f32.mrf.mxu0  ;;  %v2036_v21 = vpop.f32.mrf.mxu1 }
  0xc9   :  { %v3002_v35 = vadd.f32 %v2036_v21, %v58_v5 }
  0xca   :  { %v266_v28 = vpop.f32.mrf.mxu1 }
  0xcb   :  { %3877 = vst [vmem:[#allocation10_spill] sm:$0xff] %v3002_v35 }
  0xcc   :  { %v159_v49 = vpop.f32.mrf.mxu0 }
  0xcd   :  { %v3004_v3 = vadd.f32 %v159_v49, %v50_v42 }
  0xce   :  { %v161_v0 = vpop.f32.mrf.mxu0 }
  0xcf   :  { %3878 = vst [vmem:[#allocation11_spill] sm:$0xff] %v3004_v3  ;;  %v3006_v8 = vadd.f32 %v161_v0, %v54_v56 }
  0xd1   :  { %3879 = vst [vmem:[#allocation12_spill] sm:$0xff] %v3006_v8  ;;  %v165_v62 = vpop.f32.mrf.mxu0 }
  0xd2   :  { %v3008_v61 = vadd.f32 %v165_v62, %v50_v42 }
  0xd3   :  { %v167_v2 = vpop.f32.mrf.mxu0 }
  0xd4   :  { %3880 = vst [vmem:[#allocation13_spill] sm:$0xff] %v3008_v61  ;;  %v3010_v60 = vadd.f32 %v167_v2, %v54_v56 }
  0xd6   :  { %3881 = vst [vmem:[#allocation14_spill] sm:$0xff] %v3010_v60  ;;  %v171_v59 = vpop.f32.mrf.mxu0 }
  0xd7   :  { %v3012_v58 = vadd.f32 %v171_v59, %v50_v42 }
  0xd8   :  { %v173_v1 = vpop.f32.mrf.mxu0 }
  0xd9   :  { %3882 = vst [vmem:[#allocation15_spill] sm:$0xff] %v3012_v58  ;;  %v3014_v21 = vadd.f32 %v173_v1, %v54_v56 }
  0xdb   :  { %3883 = vst [vmem:[#allocation16_spill] sm:$0xff] %v3014_v21  ;;  %v177_v7 = vpop.f32.mrf.mxu0 }
  0xdc   :  { %v3016_v35 = vadd.f32 %v177_v7, %v50_v42 }
  0xdd   :  { %v179_v4 = vpop.f32.mrf.mxu0 }
  0xde   :  { %3884 = vst [vmem:[#allocation17_spill] sm:$0xff] %v3016_v35  ;;  %v3018_v49 = vadd.f32 %v179_v4, %v54_v56 }
  0xe0   :  { %3885 = vst [vmem:[#allocation18_spill] sm:$0xff] %v3018_v49  ;;  %v183_v0 = vpop.f32.mrf.mxu0 }
  0xe1   :  { %v3020_v8 = vadd.f32 %v183_v0, %v50_v42  ;;  %v2039_v62 = vpop.f32.mrf.mxu1 }
  0xe2   :  { %v3022_v61 = vadd.f32 %v2039_v62, %v58_v5  ;;  %v185_v2 = vpop.f32.mrf.mxu0 }
  0xe3   :  { %3886 = vst [vmem:[#allocation19_spill] sm:$0xff] %v3020_v8  ;;  %v3024_v60 = vadd.f32 %v185_v2, %v54_v56  ;;  %v276_v59 = vpop.f32.mrf.mxu1 }
  0xe4   :  { %3887 = vst [vmem:[#allocation20_spill] sm:$0xff] %v3022_v61  ;;  %v3026_v58 = vadd.f32 %v276_v59, %v58_v5 }
  0xe5   :  { %3888 = vst [vmem:[#allocation21_spill] sm:$0xff] %v3024_v60 }
  0xe6   :  { %3889 = vst [vmem:[#allocation22_spill] sm:$0xff] %v3026_v58  ;;  %v189_v1 = vpop.f32.mrf.mxu0 }
  0xe7   :  { %v3028_v21 = vadd.f32 %v189_v1, %v50_v42  ;;  %v2042_v7 = vpop.f32.mrf.mxu1 }
  0xe8   :  { %v3030_v35 = vadd.f32 %v2042_v7, %v58_v5  ;;  %v191_v4 = vpop.f32.mrf.mxu0  ;;  %v154_v7 = vadd.f32 %v153_v6, %v50_v42 }
  0xe9   :  { %3890 = vst [vmem:[#allocation23_spill] sm:$0xff] %v3028_v21  ;;  %v3032_v49 = vadd.f32 %v191_v4, %v54_v56  ;;  %v286_v0 = vpop.f32.mrf.mxu1 }
  0xea   :  { %3891 = vst [vmem:[#allocation24_spill] sm:$0xff] %v3030_v35  ;;  %v3034_v8 = vadd.f32 %v286_v0, %v58_v5  ;;  %v267_v0 = vadd.f32 %v266_v28, %v58_v5 }
  0xeb   :  { %3892 = vst [vmem:[#allocation25_spill] sm:$0xff] %v3032_v49 }
  0xec   :  { %3893 = vst [vmem:[#allocation26_spill] sm:$0xff] %v3034_v8  ;;  %v195_v62 = vpop.f32.mrf.mxu0 }
  0xed   :  { %v3036_v61 = vadd.f32 %v195_v62, %v50_v42  ;;  %v2045_v2 = vpop.f32.mrf.mxu1 }
  0xee   :  { %v3038_v60 = vadd.f32 %v2045_v2, %v58_v5  ;;  %v197_v59 = vpop.f32.mrf.mxu0 }
  0xef   :  { %3894 = vst [vmem:[#allocation27_spill] sm:$0xff] %v3036_v61  ;;  %v3040_v58 = vadd.f32 %v197_v59, %v54_v56  ;;  %v296_v1 = vpop.f32.mrf.mxu1  ;;  %v3047_v59 = vld [vmem:[%s3840_s5] ss:$0 sm:$0xff] }
  0xf0   :  { %3895 = vst [vmem:[#allocation28_spill] sm:$0xff] %v3038_v60  ;;  %v3042_v21 = vadd.f32 %v296_v1, %v58_v5 }
  0xf1   :  { %3896 = vst [vmem:[#allocation29_spill] sm:$0xff] %v3040_v58 }
  0xf2   :  { %3897 = vst [vmem:[#allocation30_spill] sm:$0xff] %v3042_v21  ;;  %v461_v35 = vpop.f32.mrf.mxu0 }
  0xf3   :  { %v536_v3 = vadd.f32 %v461_v35, %v154_v7  ;;  %v532_v4 = vpop.f32.mrf.mxu1 }
  0xf4   :  { %v547_v8 = vadd.f32 %v532_v4, %v267_v0  ;;  %v463_v6 = vpop.f32.mrf.mxu0  ;;  %v3902_v0 = vld [vmem:[#allocation7_spill] sm:$0xff] }
  0xf5   :  { %v1850_v49 = vmul.f32 -1.442695, %v536_v3  ;;  %v2080_v57 = vpop.f32.mrf.mxu1  ;;  %v543_v35 = vadd.f32 %v3047_v59, %v463_v6  ;;  %v3905_v6 = vld [vmem:[#allocation3_spill] sm:$0xff] }
  0xf6   :  { %v1851_v62 = vmul.f32 -1.442695, %v547_v8  ;;  %v156_v57 = vadd.f32 %v3000_v9, %v54_v56  ;;  %v3900_v9 = vld [vmem:[#allocation5_spill] sm:$0xff]  ;;  %v3901_v56 = vld [vmem:[#allocation6_spill] sm:$0xff] }
  0xf7   :  { %2363 = vpow2.f32 %v1850_v49 }
  0xf8   :  { %2365 = vpow2.f32 %v1851_v62  ;;  %v3903_v62 = vld [vmem:[#allocation8_spill] sm:$0xff] }
 0x104   :  { %v2364_v61 = vpop.eup %2363 }
 0x105   :  { %v540_v2 = vadd.f32 1.0, %v2364_v61  ;;  %v2366_v60 = vpop.eup %2365 }
 0x106   :  { %v551_v42 = vadd.f32 1.0, %v2366_v60  ;;  %v3898_v60 = vmov 0.0  }
 0x107   :  { %2367 = vrcp.f32 %v540_v2  ;;  %v3904_v2 = vld [vmem:[#allocation9_spill] sm:$0xff] }
 0x108   :  { %2369 = vrcp.f32 %v551_v42 }
 0x114   :  { %v2368_v3 = vpop.eup %2367 }
 0x115   :  { %v544_v5 = vmul.f32 %v2368_v3, %v543_v35  ;;  %v2370_v28 = vpop.eup %2369  ;;  %v3906_v3 = vld [vmem:[#allocation11_spill] sm:$0xff] }
 0x116   :  { %v554_v61 = vsub.f32 1.0, %v2370_v28  ;;  %v556_v7 = vmul.f32 %v2370_v28, %v2918_v63  ;;  %v3899_v63 = vld [vmem:[#allocation4_spill] sm:$0xff]  ;;  %v3907_v28 = vld [vmem:[#allocation10_spill] sm:$0xff] }
 0x117   :  { %v545_v8 = vadd.f32 %v544_v5, %v156_v57 }
 0x119   :  { %2371 = vtanh.f32 %v545_v8 }
 0x126   :  { %v2372_v49 = vpop.eup %2371 }
 0x127   :  { %v555_v1 = vmul.f32 %v2372_v49, %v554_v61 }
 0x129   :  { %v3052_v4 = vadd.f32 %v556_v7, %v555_v1 }
 0x12b   :  { %626 = vmatmul.mubr.f32.vlgmr.msra.gmra.mxu0 %v3052_v4  ;;  %2114 = vmatmul.mubr.f32.vlgmr.msra.gmra.mxu1 %v3052_v4 }
 0x12c   :  { %728 = vmatpush1.msra.mxu0 %v2581_v10  ;;  %2117 = vmatpush3.msra.mxu1 %v2588_v11 }
 0x12d   :  { %729 = vmatprep.subr.mxu0 %v2593_v12  ;;  %2118 = vmatprep.subr.mxu1 %v3898_v60 }
 0x12e   :  { %730 = vmatpush1.msra.mxu0 %v2602_v13  ;;  %2119 = vmatpush3.msra.mxu1 %v2607_v14 }
 0x12f   :  { %731 = vmatprep.subr.mxu0 %v2614_v15  ;;  %2120 = vmatprep.subr.mxu1 %v3898_v60 }
 0x130   :  { %732 = vmatpush1.msra.mxu0 %v2621_v16  ;;  %2121 = vmatpush3.msra.mxu1 %v2628_v17 }
 0x131   :  { %733 = vmatprep.subr.mxu0 %v2633_v18  ;;  %2122 = vmatprep.subr.mxu1 %v3898_v60 }
 0x132   :  { %734 = vmatpush1.msra.mxu0 %v2642_v19  ;;  %2123 = vmatpush3.msra.mxu1 %v2647_v20 }
 0x133   :  { %735 = vmatprep.subr.mxu0 %v2657_v22  ;;  %2124 = vmatprep.subr.mxu1 %v3898_v60 }
 0x134   :  { %736 = vmatpush1.msra.mxu0 %v2664_v23  ;;  %2125 = vmatpush3.msra.mxu1 %v2671_v24 }
 0x135   :  { %737 = vmatprep.subr.mxu0 %v2676_v25  ;;  %2126 = vmatprep.subr.mxu1 %v3898_v60 }
 0x136   :  { %738 = vmatpush1.msra.mxu0 %v2685_v26  ;;  %2127 = vmatpush3.msra.mxu1 %v2690_v27 }
 0x137   :  { %739 = vmatprep.subr.mxu0 %v2700_v29  ;;  %2128 = vmatprep.subr.mxu1 %v3898_v60 }
 0x138   :  { %740 = vmatpush1.msra.mxu0 %v2707_v30  ;;  %2129 = vmatpush3.msra.mxu1 %v2714_v31 }
 0x139   :  { %741 = vmatprep.subr.mxu0 %v2719_v32  ;;  %2130 = vmatprep.subr.mxu1 %v3898_v60 }
 0x13a   :  { %742 = vmatpush1.msra.mxu0 %v2728_v33  ;;  %2131 = vmatpush3.msra.mxu1 %v2733_v34 }
 0x13b   :  { %743 = vmatprep.subr.mxu0 %v2743_v36  ;;  %2132 = vmatprep.subr.mxu1 %v3898_v60 }
 0x13c   :  { %744 = vmatpush1.msra.mxu0 %v2750_v37  ;;  %2133 = vmatpush3.msra.mxu1 %v2757_v38 }
 0x13d   :  { %745 = vmatprep.subr.mxu0 %v2762_v39  ;;  %2134 = vmatprep.subr.mxu1 %v3898_v60 }
 0x13e   :  { %746 = vmatpush1.msra.mxu0 %v2771_v40  ;;  %2135 = vmatpush3.msra.mxu1 %v2778_v41 }
 0x13f   :  { %747 = vmatprep.subr.mxu0 %v2788_v43  ;;  %2136 = vmatprep.subr.mxu1 %v3898_v60 }
 0x140   :  { %748 = vmatpush1.msra.mxu0 %v2795_v44  ;;  %2137 = vmatpush3.msra.mxu1 %v2802_v45 }
 0x141   :  { %749 = vmatprep.subr.mxu0 %v2807_v46  ;;  %2138 = vmatprep.subr.mxu1 %v3898_v60 }
 0x142   :  { %750 = vmatpush1.msra.mxu0 %v2816_v47  ;;  %2139 = vmatpush3.msra.mxu1 %v2823_v48 }
 0x143   :  { %751 = vmatprep.subr.mxu0 %v2833_v50  ;;  %2140 = vmatprep.subr.mxu1 %v3898_v60 }
 0x144   :  { %752 = vmatpush1.msra.mxu0 %v2840_v51  ;;  %2141 = vmatpush3.msra.mxu1 %v2847_v52 }
 0x145   :  { %753 = vmatprep.subr.mxu0 %v2852_v53  ;;  %2142 = vmatprep.subr.mxu1 %v3898_v60 }
 0x146   :  { %754 = vmatpush1.msra.mxu0 %v2861_v54  ;;  %2143 = vmatpush3.msra.mxu1 %v2868_v55 }
 0x147   :  { %755 = vmatprep.subr.mxu0 %v3899_v63  ;;  %2144 = vmatprep.subr.mxu1 %v3898_v60 }
 0x148   :  { %756 = vmatpush1.msra.mxu0 %v3900_v9  ;;  %2145 = vmatpush3.msra.mxu1 %v3901_v56  ;;  %v3908_v56 = vld [vmem:[#allocation12_spill] sm:$0xff] }
 0x149   :  { %757 = vmatprep.subr.mxu0 %v3902_v0  ;;  %2146 = vmatprep.subr.mxu1 %v3898_v60 }
 0x14a   :  { %758 = vmatpush1.msra.mxu0 %v3903_v62  ;;  %791 = vmatprep.mubr.f32.mxu0 %v3898_v60 }
 0x14b   :  { %2147 = vmatpush3.msra.mxu1 %v3904_v2  ;;  %2148 = vmatprep.mubr.msk.f32.mxu1 %vm2497_vm1, %v3898_v60 }
 0x14c   :  { %893 = vmatprep.subr.mxu0 %v3905_v6  ;;  %2151 = vmatprep.subr.mxu1 %v3898_v60 }
 0x1eb   :  { %v627_v42 = vpop.f32.mrf.mxu0  ;;  %v698_v35 = vpop.f32.mrf.mxu1 }
 0x1ec   :  { %v702_v57 = vadd.f32 %v627_v42, %v3906_v3  ;;  %v713_v61 = vadd.f32 %v698_v35, %v3907_v28 }
 0x1ed   :  { %v2115_v5 = vpop.f32.mrf.mxu1  ;;  %v629_v21 = vpop.f32.mrf.mxu0 }
 0x1ee   :  { %v1852_v8 = vmul.f32 -1.442695, %v702_v57  ;;  %v1853_v49 = vmul.f32 -1.442695, %v713_v61  ;;  %v709_v6 = vadd.f32 %v3047_v59, %v629_v21  ;;  %v3910_v21 = vld [vmem:[#allocation7_spill] sm:$0xff] }
 0x1f0   :  { %2373 = vpow2.f32 %v1852_v8 }
 0x1f1   :  { %2375 = vpow2.f32 %v1853_v49 }
 0x1fd   :  { %v2374_v1 = vpop.eup %2373 }
 0x1fe   :  { %v706_v7 = vadd.f32 1.0, %v2374_v1  ;;  %v2376_v58 = vpop.eup %2375 }
 0x1ff   :  { %v717_v2 = vadd.f32 1.0, %v2376_v58  ;;  %v3909_v58 = vld [vmem:[#allocation6_spill] sm:$0xff] }
 0x200   :  { %2377 = vrcp.f32 %v706_v7  ;;  %v3915_v7 = vld [vmem:[#allocation22_spill] sm:$0xff] }
 0x201   :  { %2379 = vrcp.f32 %v717_v2 }
 0x20d   :  { %v2378_v62 = vpop.eup %2377 }
 0x20e   :  { %v710_v0 = vmul.f32 %v2378_v62, %v709_v6  ;;  %v2380_v3 = vpop.eup %2379  ;;  %v3914_v6 = vld [vmem:[#allocation13_spill] sm:$0xff] }
 0x20f   :  { %v720_v57 = vsub.f32 1.0, %v2380_v3  ;;  %v722_v8 = vmul.f32 %v2380_v3, %v3052_v4  ;;  %v3911_v4 = vld [vmem:[#allocation8_spill] sm:$0xff] }
 0x210   :  { %v711_v42 = vadd.f32 %v710_v0, %v3908_v56  ;;  %v3912_v56 = vld [vmem:[#allocation9_spill] sm:$0xff]  ;;  %v3913_v0 = vld [vmem:[#allocation3_spill] sm:$0xff] }
 0x212   :  { %2381 = vtanh.f32 %v711_v42 }
 0x21f   :  { %v2382_v5 = vpop.eup %2381 }
 0x220   :  { %v721_v35 = vmul.f32 %v2382_v5, %v720_v57 }
 0x222   :  { %v3128_v28 = vadd.f32 %v722_v8, %v721_v35 }
 0x224   :  { %792 = vmatmul.mubr.f32.vlgmr.msra.gmra.mxu0 %v3128_v28  ;;  %2149 = vmatmul.mubr.f32.vlgmr.msra.gmra.mxu1 %v3128_v28 }
 0x225   :  { %894 = vmatpush1.msra.mxu0 %v2581_v10  ;;  %2152 = vmatpush3.msra.mxu1 %v2588_v11 }
 0x226   :  { %895 = vmatprep.subr.mxu0 %v2593_v12  ;;  %2153 = vmatprep.subr.mxu1 %v3898_v60 }
 0x227   :  { %896 = vmatpush1.msra.mxu0 %v2602_v13  ;;  %2154 = vmatpush3.msra.mxu1 %v2607_v14 }
 0x228   :  { %897 = vmatprep.subr.mxu0 %v2614_v15  ;;  %2155 = vmatprep.subr.mxu1 %v3898_v60 }
 0x229   :  { %898 = vmatpush1.msra.mxu0 %v2621_v16  ;;  %2156 = vmatpush3.msra.mxu1 %v2628_v17 }
 0x22a   :  { %899 = vmatprep.subr.mxu0 %v2633_v18  ;;  %2157 = vmatprep.subr.mxu1 %v3898_v60 }
 0x22b   :  { %900 = vmatpush1.msra.mxu0 %v2642_v19  ;;  %2158 = vmatpush3.msra.mxu1 %v2647_v20 }
 0x22c   :  { %901 = vmatprep.subr.mxu0 %v2657_v22  ;;  %2159 = vmatprep.subr.mxu1 %v3898_v60 }
 0x22d   :  { %902 = vmatpush1.msra.mxu0 %v2664_v23  ;;  %2160 = vmatpush3.msra.mxu1 %v2671_v24 }
 0x22e   :  { %903 = vmatprep.subr.mxu0 %v2676_v25  ;;  %2161 = vmatprep.subr.mxu1 %v3898_v60 }
 0x22f   :  { %904 = vmatpush1.msra.mxu0 %v2685_v26  ;;  %2162 = vmatpush3.msra.mxu1 %v2690_v27 }
 0x230   :  { %905 = vmatprep.subr.mxu0 %v2700_v29  ;;  %2163 = vmatprep.subr.mxu1 %v3898_v60 }
 0x231   :  { %906 = vmatpush1.msra.mxu0 %v2707_v30  ;;  %2164 = vmatpush3.msra.mxu1 %v2714_v31 }
 0x232   :  { %907 = vmatprep.subr.mxu0 %v2719_v32  ;;  %2165 = vmatprep.subr.mxu1 %v3898_v60 }
 0x233   :  { %908 = vmatpush1.msra.mxu0 %v2728_v33  ;;  %2166 = vmatpush3.msra.mxu1 %v2733_v34 }
 0x234   :  { %909 = vmatprep.subr.mxu0 %v2743_v36  ;;  %2167 = vmatprep.subr.mxu1 %v3898_v60 }
 0x235   :  { %910 = vmatpush1.msra.mxu0 %v2750_v37  ;;  %2168 = vmatpush3.msra.mxu1 %v2757_v38 }
 0x236   :  { %911 = vmatprep.subr.mxu0 %v2762_v39  ;;  %2169 = vmatprep.subr.mxu1 %v3898_v60 }
 0x237   :  { %912 = vmatpush1.msra.mxu0 %v2771_v40  ;;  %2170 = vmatpush3.msra.mxu1 %v2778_v41 }
 0x238   :  { %913 = vmatprep.subr.mxu0 %v2788_v43  ;;  %2171 = vmatprep.subr.mxu1 %v3898_v60 }
 0x239   :  { %914 = vmatpush1.msra.mxu0 %v2795_v44  ;;  %2172 = vmatpush3.msra.mxu1 %v2802_v45 }
 0x23a   :  { %915 = vmatprep.subr.mxu0 %v2807_v46  ;;  %2173 = vmatprep.subr.mxu1 %v3898_v60 }
 0x23b   :  { %916 = vmatpush1.msra.mxu0 %v2816_v47  ;;  %2174 = vmatpush3.msra.mxu1 %v2823_v48 }
 0x23c   :  { %917 = vmatprep.subr.mxu0 %v2833_v50  ;;  %2175 = vmatprep.subr.mxu1 %v3898_v60 }
 0x23d   :  { %918 = vmatpush1.msra.mxu0 %v2840_v51  ;;  %2176 = vmatpush3.msra.mxu1 %v2847_v52 }
 0x23e   :  { %919 = vmatprep.subr.mxu0 %v2852_v53  ;;  %2177 = vmatprep.subr.mxu1 %v3898_v60 }
 0x23f   :  { %920 = vmatpush1.msra.mxu0 %v2861_v54  ;;  %2178 = vmatpush3.msra.mxu1 %v2868_v55 }
 0x240   :  { %921 = vmatprep.subr.mxu0 %v3899_v63  ;;  %2179 = vmatprep.subr.mxu1 %v3898_v60 }
 0x241   :  { %922 = vmatpush1.msra.mxu0 %v3900_v9  ;;  %2180 = vmatpush3.msra.mxu1 %v3909_v58  ;;  %v3916_v58 = vld [vmem:[#allocation14_spill] sm:$0xff] }
 0x242   :  { %923 = vmatprep.subr.mxu0 %v3910_v21  ;;  %2181 = vmatprep.subr.mxu1 %v3898_v60 }
 0x243   :  { %924 = vmatpush1.msra.mxu0 %v3911_v4  ;;  %957 = vmatprep.mubr.f32.mxu0 %v3898_v60 }
 0x244   :  { %2182 = vmatpush3.msra.mxu1 %v3912_v56  ;;  %2183 = vmatprep.mubr.msk.f32.mxu1 %vm2497_vm1, %v3898_v60 }
 0x245   :  { %1059 = vmatprep.subr.mxu0 %v3913_v0  ;;  %2186 = vmatprep.subr.mxu1 %v3898_v60 }
 0x2e4   :  { %v793_v62 = vpop.f32.mrf.mxu0  ;;  %v864_v2 = vpop.f32.mrf.mxu1 }
 0x2e5   :  { %v868_v61 = vadd.f32 %v793_v62, %v3914_v6  ;;  %v879_v42 = vadd.f32 %v864_v2, %v3915_v7 }
 0x2e6   :  { %v2150_v49 = vpop.f32.mrf.mxu1  ;;  %v795_v8 = vpop.f32.mrf.mxu0 }
 0x2e7   :  { %v1854_v1 = vmul.f32 -1.442695, %v868_v61  ;;  %v1855_v3 = vmul.f32 -1.442695, %v879_v42  ;;  %v875_v0 = vadd.f32 %v3047_v59, %v795_v8  ;;  %v3406_v42 = vld [vmem:[%s3837_s3 + $0xd8] sm:$0xff]  ;;  %v3437_v8 = vld [vmem:[%s3837_s3 + $0xb0] sm:$0xff] }
 0x2e9   :  { %2383 = vpow2.f32 %v1854_v1 }
 0x2ea   :  { %2385 = vpow2.f32 %v1855_v3  ;;  %v3412_v3 = vld [vmem:[%s3837_s3 + $0xe8] sm:$0xff] }
 0x2f6   :  { %v2384_v57 = vpop.eup %2383 }
 0x2f7   :  { %v872_v5 = vadd.f32 1.0, %v2384_v57  ;;  %v2386_v35 = vpop.eup %2385  ;;  %v3418_v57 = vld [vmem:[%s3837_s3 + $0xc8] sm:$0xff] }
 0x2f8   :  { %v883_v56 = vadd.f32 1.0, %v2386_v35  ;;  %v3431_v35 = vld [vmem:[%s3837_s3 + $0xd0] sm:$0xff] }
 0x2f9   :  { %2387 = vrcp.f32 %v872_v5  ;;  %v3425_v5 = vld [vmem:[%s3837_s3 + $0xc0] sm:$0xff] }
 0x2fa   :  { %2389 = vrcp.f32 %v883_v56  ;;  %v3399_v56 = vld [vmem:[%s3837_s3 + $0xe0] sm:$0xff] }
 0x306   :  { %v2388_v4 = vpop.eup %2387 }
 0x307   :  { %v876_v21 = vmul.f32 %v2388_v4, %v875_v0  ;;  %v2390_v6 = vpop.eup %2389  ;;  %v3393_v4 = vld [vmem:[%s3837_s3 + $0x100] sm:$0xff]  ;;  %v3444_v0 = vld [vmem:[%s3837_s3 + $0xa8] sm:$0xff] }
 0x308   :  { %v886_v61 = vsub.f32 1.0, %v2390_v6  ;;  %v888_v1 = vmul.f32 %v2390_v6, %v3128_v28  ;;  %v3374_v28 = vld [vmem:[%s3837_s3 + $0x118] sm:$0xff] }
 0x309   :  { %v877_v62 = vadd.f32 %v876_v21, %v3916_v58  ;;  %v3380_v58 = vld [vmem:[%s3837_s3 + $0xf8] sm:$0xff]  ;;  %v3387_v21 = vld [vmem:[%s3837_s3 + $0xf0] sm:$0xff] }
 0x30a   :  { %v3456_v6 = vld [vmem:[%s3837_s3 + $0x98] sm:$0xff] }
 0x30b   :  { %2391 = vtanh.f32 %v877_v62  ;;  %v3450_v62 = vld [vmem:[%s3837_s3 + $0xb8] sm:$0xff] }
 0x318   :  { %v2392_v49 = vpop.eup %2391 }
 0x319   :  { %v887_v2 = vmul.f32 %v2392_v49, %v886_v61  ;;  %v3463_v61 = vld [vmem:[%s3837_s3 + $0x90] sm:$0xff]  ;;  %v3469_v49 = vld [vmem:[%s3837_s3 + $0xa0] sm:$0xff] }
 0x31b   :  { %v3204_v7 = vadd.f32 %v888_v1, %v887_v2  ;;  %v3475_v2 = vld [vmem:[%s3837_s3 + $0x80] sm:$0xff]  ;;  %v3482_v1 = vld [vmem:[%s3837_s3 + $0x78] sm:$0xff] }
 0x31d   :  { %958 = vmatmul.mubr.f32.vlgmr.msra.gmra.mxu0 %v3204_v7  ;;  %2184 = vmatmul.mubr.f32.vlgmr.msra.gmra.mxu1 %v3204_v7 }
 0x31e   :  { %1060 = vmatpush1.msra.mxu0 %v2581_v10  ;;  %2187 = vmatpush3.msra.mxu1 %v2588_v11  ;;  %v3917_v10 = vld [vmem:[#allocation6_spill] sm:$0xff]  ;;  %v3918_v11 = vld [vmem:[#allocation7_spill] sm:$0xff] }
 0x31f   :  { %1061 = vmatprep.subr.mxu0 %v2593_v12  ;;  %2188 = vmatprep.subr.mxu1 %v3898_v60  ;;  %v3919_v12 = vld [vmem:[#allocation8_spill] sm:$0xff] }
 0x320   :  { %1062 = vmatpush1.msra.mxu0 %v2602_v13  ;;  %2189 = vmatpush3.msra.mxu1 %v2607_v14  ;;  %v3920_v13 = vld [vmem:[#allocation9_spill] sm:$0xff] }
 0x321   :  { %1063 = vmatprep.subr.mxu0 %v2614_v15  ;;  %2190 = vmatprep.subr.mxu1 %v3898_v60  ;;  %v3276_v14 = vld [vmem:[%s3837_s3 + $0x170] sm:$0xff] }
 0x322   :  { %1064 = vmatpush1.msra.mxu0 %v2621_v16  ;;  %2191 = vmatpush3.msra.mxu1 %v2628_v17  ;;  %3921 = vst [vmem:[#allocation4_spill] sm:$0xff] %v3276_v14  ;;  %v3922_v17 = vld [vmem:[#allocation15_spill] sm:$0xff] }
 0x323   :  { %1065 = vmatprep.subr.mxu0 %v2633_v18  ;;  %2192 = vmatprep.subr.mxu1 %v3898_v60 }
 0x324   :  { %1066 = vmatpush1.msra.mxu0 %v2642_v19  ;;  %2193 = vmatpush3.msra.mxu1 %v2647_v20 }
 0x325   :  { %1067 = vmatprep.subr.mxu0 %v2657_v22  ;;  %2194 = vmatprep.subr.mxu1 %v3898_v60  ;;  %v3923_v22 = vld [vmem:[#allocation20_spill] sm:$0xff] }
 0x326   :  { %1068 = vmatpush1.msra.mxu0 %v2664_v23  ;;  %2195 = vmatpush3.msra.mxu1 %v2671_v24 }
 0x327   :  { %1069 = vmatprep.subr.mxu0 %v2676_v25  ;;  %2196 = vmatprep.subr.mxu1 %v3898_v60 }
 0x328   :  { %1070 = vmatpush1.msra.mxu0 %v2685_v26  ;;  %2197 = vmatpush3.msra.mxu1 %v2690_v27 }
 0x329   :  { %1071 = vmatprep.subr.mxu0 %v2700_v29  ;;  %2198 = vmatprep.subr.mxu1 %v3898_v60 }
 0x32a   :  { %1072 = vmatpush1.msra.mxu0 %v2707_v30  ;;  %2199 = vmatpush3.msra.mxu1 %v2714_v31 }
 0x32b   :  { %1073 = vmatprep.subr.mxu0 %v2719_v32  ;;  %2200 = vmatprep.subr.mxu1 %v3898_v60 }
 0x32c   :  { %1074 = vmatpush1.msra.mxu0 %v2728_v33  ;;  %2201 = vmatpush3.msra.mxu1 %v2733_v34  ;;  %v3924_v34 = vld [vmem:[#allocation16_spill] sm:$0xff] }
 0x32d   :  { %1075 = vmatprep.subr.mxu0 %v2743_v36  ;;  %2202 = vmatprep.subr.mxu1 %v3898_v60 }
 0x32e   :  { %1076 = vmatpush1.msra.mxu0 %v2750_v37  ;;  %2203 = vmatpush3.msra.mxu1 %v2757_v38 }
 0x32f   :  { %1077 = vmatprep.subr.mxu0 %v2762_v39  ;;  %2204 = vmatprep.subr.mxu1 %v3898_v60 }
 0x330   :  { %1078 = vmatpush1.msra.mxu0 %v2771_v40  ;;  %2205 = vmatpush3.msra.mxu1 %v2778_v41 }
 0x331   :  { %1079 = vmatprep.subr.mxu0 %v2788_v43  ;;  %2206 = vmatprep.subr.mxu1 %v3898_v60 }
 0x332   :  { %1080 = vmatpush1.msra.mxu0 %v2795_v44  ;;  %2207 = vmatpush3.msra.mxu1 %v2802_v45  ;;  %v3292_v44 = vld [vmem:[%s3837_s3 + $0x168] sm:$0xff]  ;;  %v3298_v45 = vld [vmem:[%s3837_s3 + $0x178] sm:$0xff] }
 0x333   :  { %1081 = vmatprep.subr.mxu0 %v2807_v46  ;;  %2208 = vmatprep.subr.mxu1 %v3898_v60  ;;  %v3304_v46 = vld [vmem:[%s3837_s3 + $0x158] sm:$0xff] }
 0x334   :  { %1082 = vmatpush1.msra.mxu0 %v2816_v47  ;;  %2209 = vmatpush3.msra.mxu1 %v2823_v48  ;;  %v3311_v47 = vld [vmem:[%s3837_s3 + $0x150] sm:$0xff]  ;;  %v3317_v48 = vld [vmem:[%s3837_s3 + $0x160] sm:$0xff] }
 0x335   :  { %1083 = vmatprep.subr.mxu0 %v2833_v50  ;;  %2210 = vmatprep.subr.mxu1 %v3898_v60  ;;  %v3323_v50 = vld [vmem:[%s3837_s3 + $0x140] sm:$0xff] }
 0x336   :  { %1084 = vmatpush1.msra.mxu0 %v2840_v51  ;;  %2211 = vmatpush3.msra.mxu1 %v2847_v52  ;;  %v3330_v51 = vld [vmem:[%s3837_s3 + $0x138] sm:$0xff]  ;;  %v3336_v52 = vld [vmem:[%s3837_s3 + $0x148] sm:$0xff] }
 0x337   :  { %1085 = vmatprep.subr.mxu0 %v2852_v53  ;;  %2212 = vmatprep.subr.mxu1 %v3898_v60  ;;  %v3342_v53 = vld [vmem:[%s3837_s3 + $0x128] sm:$0xff] }
 0x338   :  { %1086 = vmatpush1.msra.mxu0 %v2861_v54  ;;  %2213 = vmatpush3.msra.mxu1 %v2868_v55  ;;  %v3349_v54 = vld [vmem:[%s3837_s3 + $0x120] sm:$0xff]  ;;  %v3355_v55 = vld [vmem:[%s3837_s3 + $0x130] sm:$0xff] }
 0x339   :  { %1087 = vmatprep.subr.mxu0 %v3899_v63  ;;  %2214 = vmatprep.subr.mxu1 %v3898_v60  ;;  %v3361_v63 = vld [vmem:[%s3837_s3 + $0x110] sm:$0xff] }
 0x33a   :  { %1088 = vmatpush1.msra.mxu0 %v3900_v9  ;;  %2215 = vmatpush3.msra.mxu1 %v3917_v10  ;;  %v3368_v9 = vld [vmem:[%s3837_s3 + $0x108] sm:$0xff] }
 0x33b   :  { %1089 = vmatprep.subr.mxu0 %v3918_v11  ;;  %2216 = vmatprep.subr.mxu1 %v3898_v60  ;;  %v3494_v10 = vld [vmem:[%s3837_s3 + $0x68] sm:$0xff]  ;;  %v3501_v11 = vld [vmem:[%s3837_s3 + $0x60] sm:$0xff] }
 0x33c   :  { %1090 = vmatpush1.msra.mxu0 %v3919_v12  ;;  %1123 = vmatprep.mubr.f32.mxu0 %v3898_v60  ;;  %v3507_v12 = vld [vmem:[%s3837_s3 + $0x70] sm:$0xff] }
 0x33d   :  { %2217 = vmatpush3.msra.mxu1 %v3920_v13  ;;  %2218 = vmatprep.mubr.msk.f32.mxu1 %vm2497_vm1, %v3898_v60  ;;  %v3513_v13 = vld [vmem:[%s3837_s3 + $0x50] sm:$0xff] }
 0x33e   :  { %1225 = vmatprep.subr.mxu0 %v3276_v14  ;;  %2221 = vmatprep.subr.mxu1 %v3898_v60 }
 0x3dd   :  { %v959_v15 = vpop.f32.mrf.mxu0  ;;  %v1030_v16 = vpop.f32.mrf.mxu1 }
 0x3de   :  { %v1034_v18 = vadd.f32 %v959_v15, %v3922_v17  ;;  %v1045_v23 = vadd.f32 %v1030_v16, %v3923_v22  ;;  %v3520_v15 = vld [vmem:[%s3837_s3 + $0x48] sm:$0xff]  ;;  %v3526_v16 = vld [vmem:[%s3837_s3 + $0x58] sm:$0xff] }
 0x3df   :  { %v2185_v19 = vpop.f32.mrf.mxu1  ;;  %v961_v29 = vpop.f32.mrf.mxu0  ;;  %v3532_v17 = vld [vmem:[%s3837_s3 + $0x38] sm:$0xff] }
 0x3e0   :  { %v1856_v20 = vmul.f32 -1.442695, %v1034_v18  ;;  %v1857_v24 = vmul.f32 -1.442695, %v1045_v23  ;;  %v1041_v31 = vadd.f32 %v3047_v59, %v961_v29  ;;  %v3539_v18 = vld [vmem:[%s3837_s3 + $0x30] sm:$0xff]  ;;  %v3545_v19 = vld [vmem:[%s3837_s3 + $0x40] sm:$0xff] }
 0x3e1   :  { %v3558_v22 = vld [vmem:[%s3837_s3 + $0x18] sm:$0xff]  ;;  %v3564_v23 = vld [vmem:[%s3837_s3 + $0x28] sm:$0xff] }
 0x3e2   :  { %2393 = vpow2.f32 %v1856_v20  ;;  %v3551_v20 = vld [vmem:[%s3837_s3 + $0x20] sm:$0xff]  ;;  %3925 = vst [vmem:[#allocation5_spill] sm:$0xff] %v3564_v23 }
 0x3e3   :  { %2395 = vpow2.f32 %v1857_v24  ;;  %v3570_v24 = vld [vmem:[%s3837_s3 + $0x8] sm:$0xff] }
 0x3e4   :  { %3926 = vst [vmem:[#allocation11_spill] sm:$0xff] %v3570_v24 }
 0x3ef   :  { %v2394_v25 = vpop.eup %2393 }
 0x3f0   :  { %v1038_v26 = vadd.f32 1.0, %v2394_v25  ;;  %v2396_v27 = vpop.eup %2395  ;;  %v3577_v25 = vld [vmem:[%s3837_s3] sm:$0xff] }
 0x3f1   :  { %v1049_v30 = vadd.f32 1.0, %v2396_v27  ;;  %3927 = vst [vmem:[#allocation10_spill] sm:$0xff] %v3577_v25 }
 0x3f2   :  { %2397 = vrcp.f32 %v1038_v26  ;;  %v3584_v26 = vld [vmem:[%s3837_s3 + $0x10] sm:$0xff] }
 0x3f3   :  { %2399 = vrcp.f32 %v1049_v30  ;;  %3928 = vst [vmem:[#allocation12_spill] sm:$0xff] %v3584_v26  ;;  %v3929_v30 = vld [vmem:[#allocation17_spill] sm:$0xff] }
 0x3ff   :  { %v2398_v32 = vpop.eup %2397 }
 0x400   :  { %v1042_v33 = vmul.f32 %v2398_v32, %v1041_v31  ;;  %v2400_v37 = vpop.eup %2399 }
 0x401   :  { %v1052_v38 = vsub.f32 1.0, %v2400_v37  ;;  %v1054_v41 = vmul.f32 %v2400_v37, %v3204_v7  ;;  %v3488_v7 = vld [vmem:[%s3837_s3 + $0x88] sm:$0xff] }
 0x402   :  { %v1043_v36 = vadd.f32 %v1042_v33, %v3924_v34  ;;  %v3930_v34 = vld [vmem:[#allocation26_spill] sm:$0xff] }
 0x404   :  { %2401 = vtanh.f32 %v1043_v36 }
 0x411   :  { %v2402_v39 = vpop.eup %2401 }
 0x412   :  { %v1053_v40 = vmul.f32 %v2402_v39, %v1052_v38 }
 0x414   :  { %v3285_v43 = vadd.f32 %v1054_v41, %v1053_v40 }
 0x416   :  { %1124 = vmatmul.mubr.f32.vlgmr.msra.gmra.mxu0 %v3285_v43  ;;  %2219 = vmatmul.mubr.f32.vlgmr.msra.gmra.mxu1 %v3285_v43 }
 0x417   :  { %1226 = vmatpush1.msra.mxu0 %v3292_v44  ;;  %2222 = vmatpush3.msra.mxu1 %v3298_v45 }
 0x418   :  { %1227 = vmatprep.subr.mxu0 %v3304_v46  ;;  %2223 = vmatprep.subr.mxu1 %v3898_v60 }
 0x419   :  { %1228 = vmatpush1.msra.mxu0 %v3311_v47  ;;  %2224 = vmatpush3.msra.mxu1 %v3317_v48 }
 0x41a   :  { %1229 = vmatprep.subr.mxu0 %v3323_v50  ;;  %2225 = vmatprep.subr.mxu1 %v3898_v60 }
 0x41b   :  { %1230 = vmatpush1.msra.mxu0 %v3330_v51  ;;  %2226 = vmatpush3.msra.mxu1 %v3336_v52 }
 0x41c   :  { %1231 = vmatprep.subr.mxu0 %v3342_v53  ;;  %2227 = vmatprep.subr.mxu1 %v3898_v60 }
 0x41d   :  { %1232 = vmatpush1.msra.mxu0 %v3349_v54  ;;  %2228 = vmatpush3.msra.mxu1 %v3355_v55 }
 0x41e   :  { %1233 = vmatprep.subr.mxu0 %v3361_v63  ;;  %2229 = vmatprep.subr.mxu1 %v3898_v60 }
 0x41f   :  { %1234 = vmatpush1.msra.mxu0 %v3368_v9  ;;  %2230 = vmatpush3.msra.mxu1 %v3374_v28 }
 0x420   :  { %1235 = vmatprep.subr.mxu0 %v3380_v58  ;;  %2231 = vmatprep.subr.mxu1 %v3898_v60 }
 0x421   :  { %1236 = vmatpush1.msra.mxu0 %v3387_v21  ;;  %2232 = vmatpush3.msra.mxu1 %v3393_v4 }
 0x422   :  { %1237 = vmatprep.subr.mxu0 %v3399_v56  ;;  %2233 = vmatprep.subr.mxu1 %v3898_v60 }
 0x423   :  { %1238 = vmatpush1.msra.mxu0 %v3406_v42  ;;  %2234 = vmatpush3.msra.mxu1 %v3412_v3 }
 0x424   :  { %1239 = vmatprep.subr.mxu0 %v3418_v57  ;;  %2235 = vmatprep.subr.mxu1 %v3898_v60 }
 0x425   :  { %1240 = vmatpush1.msra.mxu0 %v3425_v5  ;;  %2236 = vmatpush3.msra.mxu1 %v3431_v35 }
 0x426   :  { %1241 = vmatprep.subr.mxu0 %v3437_v8  ;;  %2237 = vmatprep.subr.mxu1 %v3898_v60 }
 0x427   :  { %1242 = vmatpush1.msra.mxu0 %v3444_v0  ;;  %2238 = vmatpush3.msra.mxu1 %v3450_v62 }
 0x428   :  { %1243 = vmatprep.subr.mxu0 %v3456_v6  ;;  %2239 = vmatprep.subr.mxu1 %v3898_v60 }
 0x429   :  { %1244 = vmatpush1.msra.mxu0 %v3463_v61  ;;  %2240 = vmatpush3.msra.mxu1 %v3469_v49 }
 0x42a   :  { %1245 = vmatprep.subr.mxu0 %v3475_v2  ;;  %2241 = vmatprep.subr.mxu1 %v3898_v60 }
 0x42b   :  { %1246 = vmatpush1.msra.mxu0 %v3482_v1  ;;  %2242 = vmatpush3.msra.mxu1 %v3488_v7 }
 0x42c   :  { %1247 = vmatprep.subr.mxu0 %v3494_v10  ;;  %2243 = vmatprep.subr.mxu1 %v3898_v60 }
 0x42d   :  { %1248 = vmatpush1.msra.mxu0 %v3501_v11  ;;  %2244 = vmatpush3.msra.mxu1 %v3507_v12 }
 0x42e   :  { %1249 = vmatprep.subr.mxu0 %v3513_v13  ;;  %2245 = vmatprep.subr.mxu1 %v3898_v60 }
 0x42f   :  { %1250 = vmatpush1.msra.mxu0 %v3520_v15  ;;  %2246 = vmatpush3.msra.mxu1 %v3526_v16 }
 0x430   :  { %1251 = vmatprep.subr.mxu0 %v3532_v17  ;;  %2247 = vmatprep.subr.mxu1 %v3898_v60 }
 0x431   :  { %1252 = vmatpush1.msra.mxu0 %v3539_v18  ;;  %2248 = vmatpush3.msra.mxu1 %v3545_v19 }
 0x432   :  { %1253 = vmatprep.subr.mxu0 %v3551_v20  ;;  %2249 = vmatprep.subr.mxu1 %v3898_v60 }
 0x433   :  { %1254 = vmatpush1.msra.mxu0 %v3558_v22  ;;  %2250 = vmatpush3.msra.mxu1 %v3564_v23  ;;  %v3931_v23 = vld [vmem:[#allocation18_spill] sm:$0xff] }
 0x434   :  { %1255 = vmatprep.subr.mxu0 %v3570_v24  ;;  %2251 = vmatprep.subr.mxu1 %v3898_v60 }
 0x435   :  { %1256 = vmatpush1.msra.mxu0 %v3577_v25  ;;  %1289 = vmatprep.mubr.f32.mxu0 %v3898_v60 }
 0x436   :  { %2252 = vmatpush3.msra.mxu1 %v3584_v26  ;;  %2253 = vmatprep.mubr.msk.f32.mxu1 %vm2497_vm1, %v3898_v60 }
 0x437   :  { %1391 = vmatprep.subr.mxu0 %v3276_v14  ;;  %2256 = vmatprep.subr.mxu1 %v3898_v60 }
 0x4d6   :  { %v1125_v27 = vpop.f32.mrf.mxu0  ;;  %v1196_v29 = vpop.f32.mrf.mxu1 }
 0x4d7   :  { %v1200_v31 = vadd.f32 %v1125_v27, %v3929_v30  ;;  %v1211_v36 = vadd.f32 %v1196_v29, %v3930_v34 }
 0x4d8   :  { %v2220_v32 = vpop.f32.mrf.mxu1  ;;  %v1127_v41 = vpop.f32.mrf.mxu0 }
 0x4d9   :  { %v1858_v33 = vmul.f32 -1.442695, %v1200_v31  ;;  %v1859_v37 = vmul.f32 -1.442695, %v1211_v36  ;;  %v1207_v14 = vadd.f32 %v3047_v59, %v1127_v41  ;;  %v3938_v41 = vld [vmem:[#allocation24_spill] sm:$0xff] }
 0x4db   :  { %2403 = vpow2.f32 %v1858_v33 }
 0x4dc   :  { %2405 = vpow2.f32 %v1859_v37  ;;  %v3937_v37 = vld [vmem:[#allocation19_spill] sm:$0xff] }
 0x4e8   :  { %v2404_v38 = vpop.eup %2403 }
 0x4e9   :  { %v1204_v39 = vadd.f32 1.0, %v2404_v38  ;;  %v2406_v40 = vpop.eup %2405 }
 0x4ea   :  { %v1215_v26 = vadd.f32 1.0, %v2406_v40 }
 0x4eb   :  { %2407 = vrcp.f32 %v1204_v39 }
 0x4ec   :  { %2409 = vrcp.f32 %v1215_v26 }
 0x4f8   :  { %v2408_v25 = vpop.eup %2407 }
 0x4f9   :  { %v1208_v24 = vmul.f32 %v2408_v25, %v1207_v14  ;;  %v2410_v30 = vpop.eup %2409  ;;  %v3932_v14 = vld [vmem:[#allocation5_spill] sm:$0xff]  ;;  %v3936_v25 = vld [vmem:[#allocation4_spill] sm:$0xff] }
 0x4fa   :  { %v1218_v31 = vsub.f32 1.0, %v2410_v30  ;;  %v1220_v33 = vmul.f32 %v2410_v30, %v3285_v43  ;;  %v3933_v43 = vld [vmem:[#allocation11_spill] sm:$0xff] }
 0x4fb   :  { %v1209_v27 = vadd.f32 %v1208_v24, %v3931_v23  ;;  %v3934_v23 = vld [vmem:[#allocation10_spill] sm:$0xff]  ;;  %v3935_v24 = vld [vmem:[#allocation12_spill] sm:$0xff] }
 0x4fd   :  { %2411 = vtanh.f32 %v1209_v27 }
 0x50a   :  { %v2412_v32 = vpop.eup %2411 }
 0x50b   :  { %v1219_v29 = vmul.f32 %v2412_v32, %v1218_v31 }
 0x50d   :  { %v3596_v34 = vadd.f32 %v1220_v33, %v1219_v29 }
 0x50f   :  { %1290 = vmatmul.mubr.f32.vlgmr.msra.gmra.mxu0 %v3596_v34  ;;  %2254 = vmatmul.mubr.f32.vlgmr.msra.gmra.mxu1 %v3596_v34 }
 0x510   :  { %1392 = vmatpush1.msra.mxu0 %v3292_v44  ;;  %2257 = vmatpush3.msra.mxu1 %v3298_v45 }
 0x511   :  { %1393 = vmatprep.subr.mxu0 %v3304_v46  ;;  %2258 = vmatprep.subr.mxu1 %v3898_v60 }
 0x512   :  { %1394 = vmatpush1.msra.mxu0 %v3311_v47  ;;  %2259 = vmatpush3.msra.mxu1 %v3317_v48 }
 0x513   :  { %1395 = vmatprep.subr.mxu0 %v3323_v50  ;;  %2260 = vmatprep.subr.mxu1 %v3898_v60 }
 0x514   :  { %1396 = vmatpush1.msra.mxu0 %v3330_v51  ;;  %2261 = vmatpush3.msra.mxu1 %v3336_v52 }
 0x515   :  { %1397 = vmatprep.subr.mxu0 %v3342_v53  ;;  %2262 = vmatprep.subr.mxu1 %v3898_v60 }
 0x516   :  { %1398 = vmatpush1.msra.mxu0 %v3349_v54  ;;  %2263 = vmatpush3.msra.mxu1 %v3355_v55 }
 0x517   :  { %1399 = vmatprep.subr.mxu0 %v3361_v63  ;;  %2264 = vmatprep.subr.mxu1 %v3898_v60 }
 0x518   :  { %1400 = vmatpush1.msra.mxu0 %v3368_v9  ;;  %2265 = vmatpush3.msra.mxu1 %v3374_v28 }
 0x519   :  { %1401 = vmatprep.subr.mxu0 %v3380_v58  ;;  %2266 = vmatprep.subr.mxu1 %v3898_v60 }
 0x51a   :  { %1402 = vmatpush1.msra.mxu0 %v3387_v21  ;;  %2267 = vmatpush3.msra.mxu1 %v3393_v4 }
 0x51b   :  { %1403 = vmatprep.subr.mxu0 %v3399_v56  ;;  %2268 = vmatprep.subr.mxu1 %v3898_v60 }
 0x51c   :  { %1404 = vmatpush1.msra.mxu0 %v3406_v42  ;;  %2269 = vmatpush3.msra.mxu1 %v3412_v3 }
 0x51d   :  { %1405 = vmatprep.subr.mxu0 %v3418_v57  ;;  %2270 = vmatprep.subr.mxu1 %v3898_v60 }
 0x51e   :  { %1406 = vmatpush1.msra.mxu0 %v3425_v5  ;;  %2271 = vmatpush3.msra.mxu1 %v3431_v35 }
 0x51f   :  { %1407 = vmatprep.subr.mxu0 %v3437_v8  ;;  %2272 = vmatprep.subr.mxu1 %v3898_v60 }
 0x520   :  { %1408 = vmatpush1.msra.mxu0 %v3444_v0  ;;  %2273 = vmatpush3.msra.mxu1 %v3450_v62 }
 0x521   :  { %1409 = vmatprep.subr.mxu0 %v3456_v6  ;;  %2274 = vmatprep.subr.mxu1 %v3898_v60 }
 0x522   :  { %1410 = vmatpush1.msra.mxu0 %v3463_v61  ;;  %2275 = vmatpush3.msra.mxu1 %v3469_v49 }
 0x523   :  { %1411 = vmatprep.subr.mxu0 %v3475_v2  ;;  %2276 = vmatprep.subr.mxu1 %v3898_v60 }
 0x524   :  { %1412 = vmatpush1.msra.mxu0 %v3482_v1  ;;  %2277 = vmatpush3.msra.mxu1 %v3488_v7 }
 0x525   :  { %1413 = vmatprep.subr.mxu0 %v3494_v10  ;;  %2278 = vmatprep.subr.mxu1 %v3898_v60 }
 0x526   :  { %1414 = vmatpush1.msra.mxu0 %v3501_v11  ;;  %2279 = vmatpush3.msra.mxu1 %v3507_v12 }
 0x527   :  { %1415 = vmatprep.subr.mxu0 %v3513_v13  ;;  %2280 = vmatprep.subr.mxu1 %v3898_v60 }
 0x528   :  { %1416 = vmatpush1.msra.mxu0 %v3520_v15  ;;  %2281 = vmatpush3.msra.mxu1 %v3526_v16 }
 0x529   :  { %1417 = vmatprep.subr.mxu0 %v3532_v17  ;;  %2282 = vmatprep.subr.mxu1 %v3898_v60 }
 0x52a   :  { %1418 = vmatpush1.msra.mxu0 %v3539_v18  ;;  %2283 = vmatpush3.msra.mxu1 %v3545_v19 }
 0x52b   :  { %1419 = vmatprep.subr.mxu0 %v3551_v20  ;;  %2284 = vmatprep.subr.mxu1 %v3898_v60 }
 0x52c   :  { %1420 = vmatpush1.msra.mxu0 %v3558_v22  ;;  %2285 = vmatpush3.msra.mxu1 %v3932_v14  ;;  %v3939_v14 = vld [vmem:[#allocation21_spill] sm:$0xff] }
 0x52d   :  { %1421 = vmatprep.subr.mxu0 %v3933_v43  ;;  %2286 = vmatprep.subr.mxu1 %v3898_v60 }
 0x52e   :  { %1422 = vmatpush1.msra.mxu0 %v3934_v23  ;;  %1455 = vmatprep.mubr.f32.mxu0 %v3898_v60 }
 0x52f   :  { %2287 = vmatpush3.msra.mxu1 %v3935_v24  ;;  %2288 = vmatprep.mubr.msk.f32.mxu1 %vm2497_vm1, %v3898_v60 }
 0x530   :  { %1557 = vmatprep.subr.mxu0 %v3936_v25  ;;  %2291 = vmatprep.subr.mxu1 %v3898_v60 }
 0x5cf   :  { %v1291_v26 = vpop.f32.mrf.mxu0  ;;  %v1362_v36 = vpop.f32.mrf.mxu1 }
 0x5d0   :  { %v1366_v38 = vadd.f32 %v1291_v26, %v3937_v37  ;;  %v1377_v27 = vadd.f32 %v1362_v36, %v3938_v41 }
 0x5d1   :  { %v2255_v39 = vpop.f32.mrf.mxu1  ;;  %v1293_v33 = vpop.f32.mrf.mxu0 }
 0x5d2   :  { %v1860_v40 = vmul.f32 -1.442695, %v1366_v38  ;;  %v1861_v30 = vmul.f32 -1.442695, %v1377_v27  ;;  %v1373_v25 = vadd.f32 %v3047_v59, %v1293_v33  ;;  %v3940_v59 = vld [vmem:[#allocation5_spill] sm:$0xff] }
 0x5d4   :  { %2413 = vpow2.f32 %v1860_v40 }
 0x5d5   :  { %2415 = vpow2.f32 %v1861_v30 }
 0x5e1   :  { %v2414_v31 = vpop.eup %2413 }
 0x5e2   :  { %v1370_v32 = vadd.f32 1.0, %v2414_v31  ;;  %v2416_v29 = vpop.eup %2415 }
 0x5e3   :  { %v1381_v24 = vadd.f32 1.0, %v2416_v29 }
 0x5e4   :  { %2417 = vrcp.f32 %v1370_v32  ;;  %v3948_v32 = vld [vmem:[#allocation28_spill] sm:$0xff] }
 0x5e5   :  { %2419 = vrcp.f32 %v1381_v24  ;;  %v3947_v24 = vld [vmem:[#allocation27_spill] sm:$0xff] }
 0x5f1   :  { %v2418_v23 = vpop.eup %2417 }
 0x5f2   :  { %v1374_v43 = vmul.f32 %v2418_v23, %v1373_v25  ;;  %v2420_v37 = vpop.eup %2419 }
 0x5f3   :  { %v1384_v38 = vsub.f32 1.0, %v2420_v37  ;;  %v1386_v40 = vmul.f32 %v2420_v37, %v3596_v34  ;;  %v1722_v34 = vld [vmem:[%s3841_s6 + $0x8] sm:$0xff] }
 0x5f4   :  { %v1375_v26 = vadd.f32 %v1374_v43, %v3939_v14  ;;  %v1721_v14 = vld [vmem:[%s3841_s6] sm:$0xff] }
 0x5f6   :  { %2421 = vtanh.f32 %v1375_v26 }
 0x603   :  { %v2422_v39 = vpop.eup %2421 }
 0x604   :  { %v1385_v36 = vmul.f32 %v2422_v39, %v1384_v38 }
 0x606   :  { %v3672_v41 = vadd.f32 %v1386_v40, %v1385_v36 }
 0x608   :  { %1456 = vmatmul.mubr.f32.vlgmr.msra.gmra.mxu0 %v3672_v41  ;;  %2289 = vmatmul.mubr.f32.vlgmr.msra.gmra.mxu1 %v3672_v41 }
 0x609   :  { %1558 = vmatpush1.msra.mxu0 %v3292_v44  ;;  %2292 = vmatpush3.msra.mxu1 %v3298_v45  ;;  %v3941_v44 = vld [vmem:[#allocation11_spill] sm:$0xff]  ;;  %v3942_v45 = vld [vmem:[#allocation10_spill] sm:$0xff] }
 0x60a   :  { %1559 = vmatprep.subr.mxu0 %v3304_v46  ;;  %2293 = vmatprep.subr.mxu1 %v3898_v60  ;;  %v3943_v46 = vld [vmem:[#allocation12_spill] sm:$0xff] }
 0x60b   :  { %1560 = vmatpush1.msra.mxu0 %v3311_v47  ;;  %2294 = vmatpush3.msra.mxu1 %v3317_v48 }
 0x60c   :  { %1561 = vmatprep.subr.mxu0 %v3323_v50  ;;  %2295 = vmatprep.subr.mxu1 %v3898_v60  ;;  %v3944_v50 = vld [vmem:[#allocation23_spill] sm:$0xff] }
 0x60d   :  { %1562 = vmatpush1.msra.mxu0 %v3330_v51  ;;  %2296 = vmatpush3.msra.mxu1 %v3336_v52 }
 0x60e   :  { %1563 = vmatprep.subr.mxu0 %v3342_v53  ;;  %2297 = vmatprep.subr.mxu1 %v3898_v60 }
 0x60f   :  { %1564 = vmatpush1.msra.mxu0 %v3349_v54  ;;  %2298 = vmatpush3.msra.mxu1 %v3355_v55  ;;  %v3945_v54 = vld [vmem:[#allocation30_spill] sm:$0xff] }
 0x610   :  { %1565 = vmatprep.subr.mxu0 %v3361_v63  ;;  %2299 = vmatprep.subr.mxu1 %v3898_v60 }
 0x611   :  { %1566 = vmatpush1.msra.mxu0 %v3368_v9  ;;  %2300 = vmatpush3.msra.mxu1 %v3374_v28 }
 0x612   :  { %1567 = vmatprep.subr.mxu0 %v3380_v58  ;;  %2301 = vmatprep.subr.mxu1 %v3898_v60 }
 0x613   :  { %1568 = vmatpush1.msra.mxu0 %v3387_v21  ;;  %2302 = vmatpush3.msra.mxu1 %v3393_v4 }
 0x614   :  { %1569 = vmatprep.subr.mxu0 %v3399_v56  ;;  %2303 = vmatprep.subr.mxu1 %v3898_v60  ;;  %v3747_v56 = vld [vmem:[%s3840_s5] ss:$0 sm:$0xff] }
 0x615   :  { %1570 = vmatpush1.msra.mxu0 %v3406_v42  ;;  %2304 = vmatpush3.msra.mxu1 %v3412_v3 }
 0x616   :  { %1571 = vmatprep.subr.mxu0 %v3418_v57  ;;  %2305 = vmatprep.subr.mxu1 %v3898_v60 }
 0x617   :  { %1572 = vmatpush1.msra.mxu0 %v3425_v5  ;;  %2306 = vmatpush3.msra.mxu1 %v3431_v35  ;;  %v3946_v5 = vld [vmem:[#allocation25_spill] sm:$0xff] }
 0x618   :  { %1573 = vmatprep.subr.mxu0 %v3437_v8  ;;  %2307 = vmatprep.subr.mxu1 %v3898_v60 }
 0x619   :  { %1574 = vmatpush1.msra.mxu0 %v3444_v0  ;;  %2308 = vmatpush3.msra.mxu1 %v3450_v62 }
 0x61a   :  { %1575 = vmatprep.subr.mxu0 %v3456_v6  ;;  %2309 = vmatprep.subr.mxu1 %v3898_v60 }
 0x61b   :  { %1576 = vmatpush1.msra.mxu0 %v3463_v61  ;;  %2310 = vmatpush3.msra.mxu1 %v3469_v49 }
 0x61c   :  { %1577 = vmatprep.subr.mxu0 %v3475_v2  ;;  %2311 = vmatprep.subr.mxu1 %v3898_v60  ;;  %v1736_v2 = vld [vmem:[%s3841_s6 + $0x78] sm:$0xff] }
 0x61d   :  { %1578 = vmatpush1.msra.mxu0 %v3482_v1  ;;  %2312 = vmatpush3.msra.mxu1 %v3488_v7  ;;  %v1735_v1 = vld [vmem:[%s3841_s6 + $0x70] sm:$0xff]  ;;  %v1734_v7 = vld [vmem:[%s3841_s6 + $0x68] sm:$0xff] }
 0x61e   :  { %1579 = vmatprep.subr.mxu0 %v3494_v10  ;;  %2313 = vmatprep.subr.mxu1 %v3898_v60  ;;  %v1733_v10 = vld [vmem:[%s3841_s6 + $0x60] sm:$0xff] }
 0x61f   :  { %1580 = vmatpush1.msra.mxu0 %v3501_v11  ;;  %2314 = vmatpush3.msra.mxu1 %v3507_v12  ;;  %v1732_v11 = vld [vmem:[%s3841_s6 + $0x58] sm:$0xff]  ;;  %v1731_v12 = vld [vmem:[%s3841_s6 + $0x50] sm:$0xff] }
 0x620   :  { %1581 = vmatprep.subr.mxu0 %v3513_v13  ;;  %2315 = vmatprep.subr.mxu1 %v3898_v60  ;;  %v1730_v13 = vld [vmem:[%s3841_s6 + $0x48] sm:$0xff] }
 0x621   :  { %1582 = vmatpush1.msra.mxu0 %v3520_v15  ;;  %2316 = vmatpush3.msra.mxu1 %v3526_v16  ;;  %v1729_v15 = vld [vmem:[%s3841_s6 + $0x40] sm:$0xff]  ;;  %v1728_v16 = vld [vmem:[%s3841_s6 + $0x38] sm:$0xff] }
 0x622   :  { %1583 = vmatprep.subr.mxu0 %v3532_v17  ;;  %2317 = vmatprep.subr.mxu1 %v3898_v60  ;;  %v1727_v17 = vld [vmem:[%s3841_s6 + $0x30] sm:$0xff] }
 0x623   :  { %1584 = vmatpush1.msra.mxu0 %v3539_v18  ;;  %2318 = vmatpush3.msra.mxu1 %v3545_v19  ;;  %v1726_v18 = vld [vmem:[%s3841_s6 + $0x28] sm:$0xff]  ;;  %v1725_v19 = vld [vmem:[%s3841_s6 + $0x20] sm:$0xff] }
 0x624   :  { %1585 = vmatprep.subr.mxu0 %v3551_v20  ;;  %2319 = vmatprep.subr.mxu1 %v3898_v60  ;;  %v1724_v20 = vld [vmem:[%s3841_s6 + $0x18] sm:$0xff] }
 0x625   :  { %1586 = vmatpush1.msra.mxu0 %v3558_v22  ;;  %2320 = vmatpush3.msra.mxu1 %v3940_v59  ;;  %v1723_v22 = vld [vmem:[%s3841_s6 + $0x10] sm:$0xff] }
 0x626   :  { %1587 = vmatprep.subr.mxu0 %v3941_v44  ;;  %2321 = vmatprep.subr.mxu1 %v3898_v60 }
 0x627   :  { %1588 = vmatpush1.msra.mxu0 %v3942_v45  ;;  %1621 = vmatprep.mubr.f32.mxu0 %v3898_v60 }
 0x628   :  { %2322 = vmatpush3.msra.mxu1 %v3943_v46  ;;  %2323 = vmatprep.mubr.msk.f32.mxu1 %vm2497_vm1, %v3898_v60 }
 0x629   :  { %2326 = vmatprep.subr.mxu0 %v3898_v60 }
 0x6c8   :  { %v1457_v47 = vpop.f32.mrf.mxu0  ;;  %v1528_v48 = vpop.f32.mrf.mxu1 }
 0x6c9   :  { %v1532_v51 = vadd.f32 %v1457_v47, %v3944_v50  ;;  %v1543_v55 = vadd.f32 %v1528_v48, %v3945_v54 }
 0x6ca   :  { %v2290_v52 = vpop.f32.mrf.mxu1  ;;  %v1459_v21 = vpop.f32.mrf.mxu0 }
 0x6cb   :  { %v1862_v53 = vmul.f32 -1.442695, %v1532_v51  ;;  %v1863_v63 = vmul.f32 -1.442695, %v1543_v55  ;;  %v1539_v42 = vadd.f32 %v3747_v56, %v1459_v21  ;;  %v1866_v51 = vld [vmem:[%s3843_s7] ss:$0 sm:$0xff] }
 0x6cd   :  { %2423 = vpow2.f32 %v1862_v53 }
 0x6ce   :  { %2425 = vpow2.f32 %v1863_v63 }
 0x6da   :  { %v2424_v9 = vpop.eup %2423 }
 0x6db   :  { %v1536_v28 = vadd.f32 1.0, %v2424_v9  ;;  %v2426_v58 = vpop.eup %2425 }
 0x6dc   :  { %v1547_v4 = vadd.f32 1.0, %v2426_v58 }
 0x6dd   :  { %2427 = vrcp.f32 %v1536_v28 }
 0x6de   :  { %2429 = vrcp.f32 %v1547_v4 }
 0x6ea   :  { %v2428_v3 = vpop.eup %2427 }
 0x6eb   :  { %v1540_v57 = vmul.f32 %v2428_v3, %v1539_v42  ;;  %v2430_v8 = vpop.eup %2429 }
 0x6ec   :  { %v1550_v0 = vsub.f32 1.0, %v2430_v8  ;;  %v1552_v61 = vmul.f32 %v2430_v8, %v3672_v41  ;;  %v3949_v41 = vld [vmem:[#allocation29_spill] sm:$0xff] }
 0x6ed   :  { %v1541_v35 = vadd.f32 %v1540_v57, %v3946_v5 }
 0x6ef   :  { %2431 = vtanh.f32 %v1541_v35 }
 0x6fc   :  { %v2432_v62 = vpop.eup %2431 }
 0x6fd   :  { %v1551_v6 = vmul.f32 %v2432_v62, %v1550_v0 }
 0x6ff   :  { %v3752_v49 = vadd.f32 %v1552_v61, %v1551_v6 }
 0x701   :  { %1622 = vmatmul.mubr.f32.vlgmr.msra.gmra.mxu0 %v3752_v49  ;;  %2324 = vmatmul.mubr.f32.vlgmr.msra.gmra.mxu1 %v3752_v49 }
 0x702   :  { %2358 = vmatprep.mubr.msk.f32.mxu0 %vm2497_vm1, %v3898_v60  ;;  %2327 = vmatpush3.msra.mxu0 %v1736_v2 }
 0x703   :  { %2328 = vmatprep.subr.mxu0 %v3898_v60 }
 0x704   :  { %2329 = vmatpush3.msra.mxu0 %v1735_v1 }
 0x705   :  { %2330 = vmatprep.subr.mxu0 %v3898_v60 }
 0x706   :  { %2331 = vmatpush3.msra.mxu0 %v1734_v7 }
 0x707   :  { %2332 = vmatprep.subr.mxu0 %v3898_v60 }
 0x708   :  { %2333 = vmatpush3.msra.mxu0 %v1733_v10 }
 0x709   :  { %2334 = vmatprep.subr.mxu0 %v3898_v60 }
 0x70a   :  { %2335 = vmatpush3.msra.mxu0 %v1732_v11 }
 0x70b   :  { %2336 = vmatprep.subr.mxu0 %v3898_v60 }
 0x70c   :  { %2337 = vmatpush3.msra.mxu0 %v1731_v12 }
 0x70d   :  { %2338 = vmatprep.subr.mxu0 %v3898_v60 }
 0x70e   :  { %2339 = vmatpush3.msra.mxu0 %v1730_v13 }
 0x70f   :  { %2340 = vmatprep.subr.mxu0 %v3898_v60 }
 0x710   :  { %2341 = vmatpush3.msra.mxu0 %v1729_v15 }
 0x711   :  { %2342 = vmatprep.subr.mxu0 %v3898_v60 }
 0x712   :  { %2343 = vmatpush3.msra.mxu0 %v1728_v16 }
 0x713   :  { %2344 = vmatprep.subr.mxu0 %v3898_v60 }
 0x714   :  { %2345 = vmatpush3.msra.mxu0 %v1727_v17 }
 0x715   :  { %2346 = vmatprep.subr.mxu0 %v3898_v60 }
 0x716   :  { %2347 = vmatpush3.msra.mxu0 %v1726_v18 }
 0x717   :  { %2348 = vmatprep.subr.mxu0 %v3898_v60 }
 0x718   :  { %2349 = vmatpush3.msra.mxu0 %v1725_v19 }
 0x719   :  { %2350 = vmatprep.subr.mxu0 %v3898_v60 }
 0x71a   :  { %2351 = vmatpush3.msra.mxu0 %v1724_v20 }
 0x71b   :  { %2352 = vmatprep.subr.mxu0 %v3898_v60 }
 0x71c   :  { %2353 = vmatpush3.msra.mxu0 %v1723_v22 }
 0x71d   :  { %2354 = vmatprep.subr.mxu0 %v3898_v60 }
 0x71e   :  { %2355 = vmatpush3.msra.mxu0 %v1722_v34 }
 0x71f   :  { %2356 = vmatprep.subr.mxu0 %v3898_v60 }
 0x720   :  { %2357 = vmatpush3.msra.mxu0 %v1721_v14 }
 0x7c1   :  { %v1623_v43 = vpop.f32.mrf.mxu0  ;;  %v1694_v23 = vpop.f32.mrf.mxu1 }
 0x7c2   :  { %v1698_v27 = vadd.f32 %v1623_v43, %v3947_v24  ;;  %v1709_v29 = vadd.f32 %v1694_v23, %v3948_v32 }
 0x7c3   :  { %v2325_v30 = vpop.f32.mrf.mxu1  ;;  %v1625_v38 = vpop.f32.mrf.mxu0 }
 0x7c4   :  { %v1864_v31 = vmul.f32 -1.442695, %v1698_v27  ;;  %v1865_v33 = vmul.f32 -1.442695, %v1709_v29  ;;  %v1705_v60 = vadd.f32 %v3747_v56, %v1625_v38 }
 0x7c6   :  { %2433 = vpow2.f32 %v1864_v31 }
 0x7c7   :  { %2435 = vpow2.f32 %v1865_v33 }
 0x7d3   :  { %v2434_v25 = vpop.eup %2433 }
 0x7d4   :  { %v1702_v26 = vadd.f32 1.0, %v2434_v25  ;;  %v2436_v37 = vpop.eup %2435 }
 0x7d5   :  { %v1713_v39 = vadd.f32 1.0, %v2436_v37 }
 0x7d6   :  { %2437 = vrcp.f32 %v1702_v26 }
 0x7d7   :  { %2439 = vrcp.f32 %v1713_v39 }
 0x7e3   :  { %v2438_v36 = vpop.eup %2437 }
 0x7e4   :  { %v1706_v40 = vmul.f32 %v2438_v36, %v1705_v60  ;;  %v2440_v44 = vpop.eup %2439 }
 0x7e5   :  { %v1716_v45 = vsub.f32 1.0, %v2440_v44  ;;  %v1718_v48 = vmul.f32 %v2440_v44, %v3752_v49 }
 0x7e6   :  { %v1707_v59 = vadd.f32 %v1706_v40, %v3949_v41 }
 0x7e8   :  { %2441 = vtanh.f32 %v1707_v59 }
 0x7f5   :  { %v2442_v46 = vpop.eup %2441 }
 0x7f6   :  { %v1717_v47 = vmul.f32 %v2442_v46, %v1716_v45 }
 0x7f8   :  { %v1719_v50 = vadd.f32 %v1718_v48, %v1717_v47 }
 0x7fa   :  { %1720 = vst [vmem:[%s3842_s9] sm:$0xff] %v1719_v50  ;;  %2359 = vmatmul.mubr.f32.vlgmr.msra.gmra.mxu0 %v1719_v50 }
 0x8ba   :  { %v1810_v52 = vpop.f32.mrf.mxu0 }
 0x8bb   :  { %v1811_v53 = vadd.f32 %v1866_v51, %v1810_v52 }
 0x8bc   :  { %v2360_v54 = vpop.f32.mrf.mxu0 }
 0x8bd   :  { %1814 = vmax.xlane.f32.xlu0 %v1811_v53 }
 0x946   :  { %v1815_v55 = vpop.xlane.xlu0 %1814 }
 0x947   :  { %v1816_v63 = vsub.f32 %v1811_v53, %v1815_v55 }
 0x949   :  { %v1817_v9 = vmul.f32 1.442695, %v1816_v63 }
 0x94b   :  { %2443 = vpow2.f32 %v1817_v9 }
 0x958   :  { %v2444_v28 = vpop.eup %2443 }
 0x959   :  { %1819 = vadd.xlane.f32.xlu0 %v2444_v28 }
 0x9e2   :  { %v1820_v58 = vpop.xlane.xlu0 %1819 }
 0x9e3   :  { %2445 = vlog2.f32 %v1820_v58 }
 0x9f0   :  { %v2446_v21 = vpop.eup %2445 }
 0x9f1   :  { %v1822_v4 = vmul.f32 0.6931472, %v2446_v21 }
 0x9f3   :  { %v1823_v56 = vsub.f32 %v1816_v63, %v1822_v4 }
 0x9f5   :  { %1824 = vst [vmem:[%s3844_s8] sm:$0xff] %v1823_v56 }

</bundles_post_ra>
